<compile_context>
chip_gen: v7x
topology: tpu7x:2x2x1
jax: 0.10.0
libtpu: 0.0.40
codegen_flags: <defaults>
</compile_context>

<pallas_src>
import functools

import jax
import jax.numpy as jnp
from jax.experimental import pallas as pl
from jax.experimental.pallas import tpu as pltpu

EPS = 1e-5          # nn.BatchNorm2d default
LANE = 128


def _round_up(x, m):
    return (x + m - 1) // m * m


def _conv_stats_kernel(x_ref, w_ref, mask_ref, acc_ref, stats_ref, *,
                       ks, wp, tile_rows, k_extra):
    """Pass 1: in-VMEM im2col -> conv matmul tile + masked per-channel sum/sumsq."""
    t = pl.program_id(1)
    base = t * tile_rows
    halo = (ks - 1) * wp + (ks - 1)

    # One dynamic-start slab load covering all ks*ks shifted windows of this tile;
    # the individual windows are then cheap static slices of a VMEM value.
    sup = x_ref[0, pl.ds(base, tile_rows + halo), :]           # (tile_rows+halo, Cin) bf16

    pieces = []
    for kh in range(ks):
        for kw in range(ks):
            off = kh * wp + kw
            pieces.append(sup[off:off + tile_rows, :])          # (tile_rows, Cin)
    if k_extra:
        pieces.append(jnp.zeros((tile_rows, k_extra), sup.dtype))
    lhs = jnp.concatenate(pieces, axis=-1)                      # (tile_rows, K_pad) bf16

    acc = jnp.dot(lhs, w_ref[...], preferred_element_type=jnp.float32)
    acc_ref[...] = acc.astype(acc_ref.dtype)                    # bf16 intermediate

    # BN batch-stat partials from the f32 accumulator; mask kills wrap-around /
    # padding rows so the global stats only see the N*Ho*Wo valid outputs.
    masked = acc * mask_ref[...]                                # (tile_rows, C_pad)
    stats_ref[...] = jnp.zeros_like(stats_ref)
    stats_ref[0:1, :] = jnp.sum(masked, axis=0, keepdims=True)
    stats_ref[1:2, :] = jnp.sum(masked * masked, axis=0, keepdims=True)


def _bn_act_kernel(acc_ref, scale_ref, shift_ref, o_ref, *, relu):
    """Pass 2: folded BatchNorm (scale/shift) + optional ReLU6."""
    y = acc_ref[...].astype(jnp.float32) * scale_ref[...] + shift_ref[...]
    if relu:
        y = jnp.clip(y, 0.0, 6.0)
    o_ref[...] = y.astype(o_ref.dtype)


def conv2d_bn_relu6(x_nchw, weight, gamma, beta, *, ks=3, sd=1, pd=-1, grp=1,
                    relu=True, tile_rows_target=512):
    """x_nchw: (N, Cin, H, W) f32, weight: (Cout, Cin, ks, ks) f32."""
    assert sd == 1, "stride=1 only for this kernel"
    assert grp == 1, "groups=1 only for this kernel"
    if pd < 0:
        pd = (ks - 1) // 2
    N, Cin, H, W = x_nchw.shape
    Cout = weight.shape[0]
    assert weight.shape == (Cout, Cin, ks, ks)

    Hp, Wp = H + 2 * pd, W + 2 * pd
    Ho, Wo = Hp - ks + 1, Wp - ks + 1

    # "Virtual" output rows are laid out with width Wp so that every shifted conv
    # window is a contiguous slab of the flattened padded image.  The last ks-1
    # columns of each row are wrap-around garbage: masked out of the stats and
    # sliced off at the end.
    Mv = Ho * Wp
    tile_rows = min(_round_up(Mv, 16), _round_up(tile_rows_target, 16))
    n_t = pl.cdiv(Mv, tile_rows)
    Mv_pad = n_t * tile_rows
    halo = (ks - 1) * Wp + (ks - 1)
    Lp = _round_up(Mv_pad + halo, 8)          # flattened-image length incl. halo pad

    C_pad = _round_up(Cout, LANE)             # lane-dense stores
    K = ks * ks * Cin
    K_pad = _round_up(K, 16)                  # bf16 sublane packing
    k_extra = K_pad - K

    # ---- glue: NCHW -> padded, flattened NHWC (no im2col materialization) ----
    x_nhwc = jnp.transpose(x_nchw, (0, 2, 3, 1))
    x_p = jnp.pad(x_nhwc, ((0, 0), (pd, pd), (pd, pd), (0, 0)))
    x_flat = x_p.reshape(N, Hp * Wp, Cin).astype(jnp.bfloat16)
    x_flat = jnp.pad(x_flat, ((0, 0), (0, Lp - Hp * Wp), (0, 0)))   # zero halo rows

    # weight in (kh, kw, cin) K-order to match the in-kernel concat order
    w2d = jnp.transpose(weight, (2, 3, 1, 0)).reshape(K, Cout).astype(jnp.bfloat16)
    w2d = jnp.pad(w2d, ((0, k_extra), (0, C_pad - Cout)))

    # per-virtual-row validity mask (same for every image)
    mv = jnp.arange(Mv_pad, dtype=jnp.int32)
    valid = ((mv % Wp) < Wo) & (mv < Mv)
    mask = valid.astype(jnp.float32).reshape(Mv_pad, 1)

    # per-generation VMEM budget (v7x: 64 MiB physical, v5e/v6e: 128 MiB)
    try:
        vmem_cap = pltpu.get_tpu_info().vmem_capacity_bytes
        vmem_limit = min(int(vmem_cap * 3 // 4), 100 << 20)
    except Exception:
        vmem_limit = 48 << 20
    cparams1 = pltpu.CompilerParams(dimension_semantics=("parallel", "parallel"),
                                    vmem_limit_bytes=vmem_limit)
    cparams2 = pltpu.CompilerParams(dimension_semantics=("parallel",),
                                    vmem_limit_bytes=vmem_limit)

    M2 = N * Mv_pad
    n_tiles_total = N * n_t

    # ---- pass 1: folded-im2col conv + per-tile channel stats ----
    flops1 = 2 * M2 * K_pad * C_pad
    bytes1 = (N * Lp * Cin * 2 + K_pad * C_pad * 2 + M2 * C_pad * 2
              + n_tiles_total * 8 * C_pad * 4 + Mv_pad * 4)
    kernel1 = functools.partial(_conv_stats_kernel, ks=ks, wp=Wp,
                                tile_rows=tile_rows, k_extra=k_extra)
    acc, stats = pl.pallas_call(
        kernel1,
        out_shape=(jax.ShapeDtypeStruct((M2, C_pad), jnp.bfloat16),
                   jax.ShapeDtypeStruct((n_tiles_total * 8, C_pad), jnp.float32)),
        grid=(N, n_t),
        in_specs=[pl.BlockSpec((1, Lp, Cin), lambda n, t: (n, 0, 0)),     # image resident
                  pl.BlockSpec((K_pad, C_pad), lambda n, t: (0, 0)),      # weight resident
                  pl.BlockSpec((tile_rows, 1), lambda n, t: (t, 0))],
        out_specs=(pl.BlockSpec((tile_rows, C_pad), lambda n, t: (n * n_t + t, 0)),
                   pl.BlockSpec((8, C_pad), lambda n, t: (n * n_t + t, 0))),
        compiler_params=cparams1,
        cost_estimate=pl.CostEstimate(flops=flops1, transcendentals=0,
                                      bytes_accessed=bytes1),
    )(x_flat, w2d, mask)

    # ---- fold global (over all valid rows) batch stats into scale/shift (tiny) ----
    stats = stats.reshape(n_tiles_total, 8, C_pad)
    ch_sum = jnp.sum(stats[:, 0, :], axis=0)
    ch_sq = jnp.sum(stats[:, 1, :], axis=0)
    cnt = float(N * Ho * Wo)
    mean = ch_sum / cnt
    # TODO(synk): E[x^2]-E[x]^2 in f32 can cancel for very large M; use a shifted /
    #             two-pass variance if BN accuracy at scale matters.
    var = jnp.maximum(ch_sq / cnt - mean * mean, 0.0)
    g_pad = jnp.pad(gamma.astype(jnp.float32), (0, C_pad - Cout), constant_values=1.0)
    b_pad = jnp.pad(beta.astype(jnp.float32), (0, C_pad - Cout))
    s = g_pad * jax.lax.rsqrt(var + EPS)
    scale = s.reshape(1, C_pad)
    shift = (b_pad - mean * s).reshape(1, C_pad)

    # ---- pass 2: normalize + ReLU6 (larger tiles than pass 1) ----
    fold = 1
    for cand in (8, 4, 2):
        if n_tiles_total % cand == 0 and cand * tile_rows <= 2048:
            fold = cand
            break
    tile_m2 = fold * tile_rows
    grid2 = n_tiles_total // fold

    flops2 = 3 * M2 * C_pad
    bytes2 = M2 * C_pad * (2 + 4) + 2 * C_pad * 4
    kernel2 = functools.partial(_bn_act_kernel, relu=relu)
    out2d = pl.pallas_call(
        kernel2,
        out_shape=jax.ShapeDtypeStruct((M2, C_pad), jnp.float32),
        grid=(grid2,),
        in_specs=[pl.BlockSpec((tile_m2, C_pad), lambda i: (i, 0)),
                  pl.BlockSpec((1, C_pad), lambda i: (0, 0)),
                  pl.BlockSpec((1, C_pad), lambda i: (0, 0))],
        out_specs=pl.BlockSpec((tile_m2, C_pad), lambda i: (i, 0)),
        compiler_params=cparams2,
        cost_estimate=pl.CostEstimate(flops=flops2, transcendentals=0,
                                      bytes_accessed=bytes2),
    )(acc, scale, shift)

    # strip virtual-width / padding rows + channel padding; return NCHW
    out = out2d.reshape(N, Mv_pad, C_pad)[:, :Mv, :]
    out = out.reshape(N, Ho, Wp, C_pad)[:, :, :Wo, :Cout]
    return jnp.transpose(out, (0, 3, 1, 2))


if __name__ == "__main__":
    key = jax.random.PRNGKey(0)
    N, Cin, H, W = 2, 4, 16, 16
    Cout, ks = 8, 3

    kx, kw = jax.random.split(key)
    x = jax.random.normal(kx, (N, Cin, H, W), dtype=jnp.float32)
    weight = 0.1 * jax.random.normal(kw, (Cout, Cin, ks, ks), dtype=jnp.float32)
    gamma = jnp.ones((Cout,), dtype=jnp.float32)
    beta = jnp.zeros((Cout,), dtype=jnp.float32)

    out = conv2d_bn_relu6(x, weight, gamma, beta, ks=ks, sd=1, pd=-1)
    jax.block_until_ready(out)
    assert out.shape == (N, Cout, H, W)

    # Reference: f32 conv -> train-mode (batch-stat) BN -> ReLU6
    ref_conv = jax.lax.conv_general_dilated(
        x, weight, window_strides=(1, 1), padding=[(1, 1), (1, 1)],
        dimension_numbers=("NCHW", "OIHW", "NCHW"))
    r_mean = jnp.mean(ref_conv, axis=(0, 2, 3), keepdims=True)
    r_var = jnp.mean((ref_conv - r_mean) ** 2, axis=(0, 2, 3), keepdims=True)
    ref = jnp.clip((ref_conv - r_mean) * jax.lax.rsqrt(r_var + EPS)
                   * gamma.reshape(1, -1, 1, 1) + beta.reshape(1, -1, 1, 1), 0.0, 6.0)
    err = float(jnp.max(jnp.abs(out - ref)))
    assert err < 1e-1, f"max abs err {err}"
    print("KERNEL_OK")
</pallas_src>

<mosaic_0001>
module attributes {stable_mosaic.version = 11 : i64} {
  func.func @_conv_stats_kernel(%arg0: i32, %arg1: i32, %arg2: memref<1x328x4xbf16, #tpu.memory_space<vmem>>, %arg3: memref<48x128xbf16, #tpu.memory_space<vmem>>, %arg4: memref<288x1xf32, #tpu.memory_space<vmem>>, %arg5: memref<288x128xbf16, #tpu.memory_space<vmem>>, %arg6: memref<8x128xf32, #tpu.memory_space<vmem>>) attributes {dimension_semantics = [#tpu.dimension_semantics<parallel>, #tpu.dimension_semantics<parallel>], iteration_bounds = array<i64: 2, 1>, scalar_prefetch = 0 : i64, scratch_operands = 0 : i64, tpu.core_type = #tpu.core_type<tc>, window_params = [{transform_indices = @transform_0, window_bounds = array<i64: 1, 328, 4>}, {pipeline_mode = #tpu.pipeline_mode<synchronous>, transform_indices = @transform_1, window_bounds = array<i64: 48, 128>}, {transform_indices = @transform_2, window_bounds = array<i64: 288, 1>}, {transform_indices = @transform_3, window_bounds = array<i64: 288, 128>}, {transform_indices = @transform_4, window_bounds = array<i64: 8, 128>}]} {
    %c288_i32 = arith.constant 288 : i32
    %0 = arith.muli %arg1, %c288_i32 : i32
    %c0 = arith.constant 0 : index
    %1 = arith.index_cast %0 : i32 to index
    %c0_0 = arith.constant 0 : index
    %2 = vector.load %arg2[%c0, %1, %c0_0] : memref<1x328x4xbf16, #tpu.memory_space<vmem>>, vector<1x326x4xbf16>
    %3 = vector.shape_cast %2 : vector<1x326x4xbf16> to vector<326x4xbf16>
    %4 = vector.extract_strided_slice %3 {offsets = [0, 0], sizes = [288, 4], strides = [1, 1]} : vector<326x4xbf16> to vector<288x4xbf16>
    %5 = vector.extract_strided_slice %3 {offsets = [1, 0], sizes = [288, 4], strides = [1, 1]} : vector<326x4xbf16> to vector<288x4xbf16>
    %6 = vector.extract_strided_slice %3 {offsets = [2, 0], sizes = [288, 4], strides = [1, 1]} : vector<326x4xbf16> to vector<288x4xbf16>
    %7 = vector.extract_strided_slice %3 {offsets = [18, 0], sizes = [288, 4], strides = [1, 1]} : vector<326x4xbf16> to vector<288x4xbf16>
    %8 = vector.extract_strided_slice %3 {offsets = [19, 0], sizes = [288, 4], strides = [1, 1]} : vector<326x4xbf16> to vector<288x4xbf16>
    %9 = vector.extract_strided_slice %3 {offsets = [20, 0], sizes = [288, 4], strides = [1, 1]} : vector<326x4xbf16> to vector<288x4xbf16>
    %10 = vector.extract_strided_slice %3 {offsets = [36, 0], sizes = [288, 4], strides = [1, 1]} : vector<326x4xbf16> to vector<288x4xbf16>
    %11 = vector.extract_strided_slice %3 {offsets = [37, 0], sizes = [288, 4], strides = [1, 1]} : vector<326x4xbf16> to vector<288x4xbf16>
    %12 = vector.extract_strided_slice %3 {offsets = [38, 0], sizes = [288, 4], strides = [1, 1]} : vector<326x4xbf16> to vector<288x4xbf16>
    %cst = arith.constant 0.000000e+00 : bf16
    %13 = vector.broadcast %cst : bf16 to vector<288x12xbf16>
    %14 = tpu.concatenate %4, %5, %6, %7, %8, %9, %10, %11, %12, %13 in 1 : vector<288x4xbf16>, vector<288x4xbf16>, vector<288x4xbf16>, vector<288x4xbf16>, vector<288x4xbf16>, vector<288x4xbf16>, vector<288x4xbf16>, vector<288x4xbf16>, vector<288x4xbf16>, vector<288x12xbf16> -> vector<288x48xbf16>
    %c0_1 = arith.constant 0 : index
    %c0_2 = arith.constant 0 : index
    %15 = vector.load %arg3[%c0_1, %c0_2] : memref<48x128xbf16, #tpu.memory_space<vmem>>, vector<48x128xbf16>
    %cst_3 = arith.constant dense<0.000000e+00> : vector<288x128xf32>
    %16 = tpu.matmul %14, %15, %cst_3 {dimension_numbers = #tpu.dot_dimension_numbers<[1], [0], [0], [1], [0, 0, 1, 1], [], []>} : vector<288x48xbf16>, vector<48x128xbf16>, vector<288x128xf32> -> vector<288x128xf32>
    %17 = arith.truncf %16 : vector<288x128xf32> to vector<288x128xbf16>
    %c0_4 = arith.constant 0 : index
    %c0_5 = arith.constant 0 : index
    %18 = vector.load %arg5[%c0_4, %c0_5] : memref<288x128xbf16, #tpu.memory_space<vmem>>, vector<288x128xbf16>
    tpu.vector_store %arg5[%c0_4, %c0_5], %17 {strides = array<i32>} : memref<288x128xbf16, #tpu.memory_space<vmem>>, vector<288x128xbf16>,
    %c0_6 = arith.constant 0 : index
    %c0_7 = arith.constant 0 : index
    %19 = vector.load %arg4[%c0_6, %c0_7] : memref<288x1xf32, #tpu.memory_space<vmem>>, vector<288x1xf32>
    %20 = vector.broadcast %19 : vector<288x1xf32> to vector<288x128xf32>
    %21 = arith.mulf %16, %20 : vector<288x128xf32>
    %cst_8 = arith.constant 0.000000e+00 : f32
    %22 = vector.broadcast %cst_8 : f32 to vector<8x128xf32>
    %c0_9 = arith.constant 0 : index
    %c0_10 = arith.constant 0 : index
    %23 = vector.load %arg6[%c0_9, %c0_10] : memref<8x128xf32, #tpu.memory_space<vmem>>, vector<8x128xf32>
    tpu.vector_store %arg6[%c0_9, %c0_10], %22 {strides = array<i32>} : memref<8x128xf32, #tpu.memory_space<vmem>>, vector<8x128xf32>,
    %cst_11 = arith.constant dense<0.000000e+00> : vector<128xf32>
    %24 = vector.multi_reduction <add>, %21, %cst_11 [0] : vector<288x128xf32> to vector<128xf32>
    %25 = vector.shape_cast %24 : vector<128xf32> to vector<1x128xf32>
    %c0_12 = arith.constant 0 : index
    %c0_13 = arith.constant 0 : index
    %26 = vector.load %arg6[%c0_12, %c0_13] : memref<8x128xf32, #tpu.memory_space<vmem>>, vector<1x128xf32>
    tpu.vector_store %arg6[%c0_12, %c0_13], %25 {strides = array<i32>} : memref<8x128xf32, #tpu.memory_space<vmem>>, vector<1x128xf32>,
    %27 = arith.mulf %21, %21 : vector<288x128xf32>
    %cst_14 = arith.constant dense<0.000000e+00> : vector<128xf32>
    %28 = vector.multi_reduction <add>, %27, %cst_14 [0] : vector<288x128xf32> to vector<128xf32>
    %29 = vector.shape_cast %28 : vector<128xf32> to vector<1x128xf32>
    %c1 = arith.constant 1 : index
    %c0_15 = arith.constant 0 : index
    %30 = vector.load %arg6[%c1, %c0_15] : memref<8x128xf32, #tpu.memory_space<vmem>>, vector<1x128xf32>
    tpu.vector_store %arg6[%c1, %c0_15], %29 {strides = array<i32>} : memref<8x128xf32, #tpu.memory_space<vmem>>, vector<1x128xf32>,
    return
  }
  func.func @transform_0(%arg0: i32, %arg1: i32) -> (i32, i32, i32) {
    %c0_i32 = arith.constant 0 : i32
    %c0_i32_0 = arith.constant 0 : i32
    %c0_i32_1 = arith.constant 0 : i32
    return %arg0, %c0_i32, %c0_i32_0 : i32, i32, i32
  }
  func.func @transform_1(%arg0: i32, %arg1: i32) -> (i32, i32) {
    %c0_i32 = arith.constant 0 : i32
    %c0_i32_0 = arith.constant 0 : i32
    %c0_i32_1 = arith.constant 0 : i32
    return %c0_i32, %c0_i32_0 : i32, i32
  }
  func.func @transform_2(%arg0: i32, %arg1: i32) -> (i32, i32) {
    %c0_i32 = arith.constant 0 : i32
    %c0_i32_0 = arith.constant 0 : i32
    return %arg1, %c0_i32 : i32, i32
  }
  func.func @transform_3(%arg0: i32, %arg1: i32) -> (i32, i32) {
    %c1_i32 = arith.constant 1 : i32
    %0 = arith.muli %arg0, %c1_i32 : i32
    %1 = arith.addi %0, %arg1 : i32
    %c0_i32 = arith.constant 0 : i32
    %c0_i32_0 = arith.constant 0 : i32
    return %1, %c0_i32 : i32, i32
  }
  func.func @transform_4(%arg0: i32, %arg1: i32) -> (i32, i32) {
    %c1_i32 = arith.constant 1 : i32
    %0 = arith.muli %arg0, %c1_i32 : i32
    %1 = arith.addi %0, %arg1 : i32
    %c0_i32 = arith.constant 0 : i32
    %c0_i32_0 = arith.constant 0 : i32
    return %1, %c0_i32 : i32, i32
  }
}

</mosaic_0001>

<bundles_post_ra>
// kernel: tpu_custom_call.1
= control target key start
LH: loop header
LB: loop body
LE: loop exit
PB: predicated region body
PF: predicated region fallthrough
CT: control target
= control target key end

     0   :  { %10 = vsyncpa [#allocation3], 0  ;;  %s4376_s0 = inlined_call_operand.vmem [shape: bf16[2,328,4], index: 0, kind: input, shape index: {}]   ;;  %s4377_s1 = inlined_call_operand.vmem [shape: bf16[48,128], index: 1, kind: input, shape index: {}]   ;;  %s4378_s2 = inlined_call_operand.vmem [shape: f32[288,1], index: 2, kind: input, shape index: {}]   ;;  %s4379_s3 = inlined_call_operand.hbm [shape: bf16[576,128], index: 3, kind: output, shape index: {0}]   ;;  %s4380_s4 = inlined_call_operand.hbm [shape: f32[16,128], index: 4, kind: output, shape index: {1}]  }
   0x1   :  { %12 = vsyncpa [#allocation3 + $0x1], 0 }
   0x2   :  { %13 = vsyncpa [#allocation5], 0 }
   0x3   :  { %15 = vsyncpa [#allocation5 + $0x1], 0  ;;  %s2966_s15 = smov 0   ;;  %s2968_s16 = smov 0  }
   0x4   :  { %s2970_s17 = smov 0   ;;  %s2972_s18 = smov 0  }
   0x5   :  { %s2974_s19 = smov 0   ;;  %s2976_s20 = smov 0  }
   0x6 LB: > { %s2393_s21 = sadd.s32 4294967295, %s2926_s20   ;;  %s2394_s22 = sadd.s32 4294967294, %s2926_s20   ;;  %s2926_s20 = sphi %s2976_s20, %s21_s20   ;;  %s2922_s19 = sphi %s2974_s19, %s4446_s19   ;;  %s2918_s18 = sphi %s2972_s18, %s4445_s18   ;;  %s2914_s17 = sphi %s2970_s17, %s4444_s17   ;;  %s2910_s16 = sphi %s2968_s16, %s4443_s16   ;;  %s2906_s15 = sphi %s2966_s15, %s4442_s15  }
   0x7   : > { %s33_s23 = sadd.s32 1, %s2922_s19  ;;  %s115_s24 = sadd.s32 1, %s2914_s17 }
   0x8   : > { %p35_p0 = scmp.ge.s32.totalorder %s33_s23, 2  ;;  %p125_p1 = scmp.ne.s32.totalorder %s2914_s17, %s2910_s16 }
   0x9   : > { %p126_p2 = scmp.eq.s32.totalorder %s2393_s21, 1  ;;  %p131_p3 = scmp.ne.s32.totalorder %s2910_s16, %s2906_s15 }
   0xa   : > { %s4448_s23 = smov (%p35_p0, %s33_s23), 0  ;;  %p132_p5 = scmp.eq.s32.totalorder %s2394_s22, 1 }
   0xb   : > { %p3006_p4 = por %p126_p2, %p125_p1  ;;  %s112_s26 = ssub.s32 %s2922_s19, %s4448_s23 }
   0xc   : > { %p2398_p6 = scmp.ge.s32.totalorder %s2926_s20, 1  ;;  %p113_p7 = scmp.eq.s32.totalorder %s112_s26, 0 }
   0xd   : > { %p3013_p8 = por %p132_p5, %p131_p3  ;;  %p198_p9 = scmp.lt.s32.totalorder %s2926_s20, 3 }
   0xe   : > { %s3019_s28 = scalar_select %p113_p7, %s2914_s17, %s115_s24  }
   0xf   : > { %p199_p10 = pnand %p2398_p6, %p198_p9 }
  0x11   : > { %202 = sbr.rel (%p199_p10) target bundleno = 704 (0x2c0), region = 32 }
  0x18   : > { %p234_p11 = scmp.lt.s32.totalorder %s2918_s18, 1  ;;  %vm388_vm0 = vsmask.f32 7424  ;;  %s2928_s8 = smov 4   ;;  %vm573_vm1 = vcmask 1046528   ;;  %vm815_vm4 = vcmask 1045504  }
  0x19   : > { %vm693_vm2 = vsmask.f32 6400  ;;  %vm935_vm3 = vsmask.f32 5376  ;;  %s2929_s9 = smov 8   ;;  %s2930_s12 = smov 12  }
  0x1a   : > { %s235_s29 = scalar_select %p234_p11, %s2918_s18, 1  ;;  %vm1057_vm5 = vcmask 1044480   ;;  %vm1168_vm6 = vcmask 64512   ;;  %vm1131_vm7 = vcmask 31744   ;;  %vm1205_vm8 = vcmask 97280  }
  0x1b   : > { %s2931_s21 = smov 16   ;;  %s2932_s26 = smov 20   ;;  %vm1242_vm9 = vcmask 130048   ;;  %vm1279_vm10 = vcmask 162816   ;;  %vm1316_vm11 = vcmask 195584   ;;  %vm1353_vm12 = vcmask 228352  }
  0x1c   : > { %s2700_s30 = smul.u32 164, %s235_s29  ;;  %s2933_s29 = smov 24   ;;  %vm1390_vm13 = vcmask 261120   ;;  %vm1427_vm14 = vcmask 293888   ;;  %vm1471_vm15 = vcmask 392192  }
  0x1d   : > { %s2935_s5 = smov 32   ;;  %s2522_s14 = smul.u32 2304, %s2918_s18 }
  0x1e   : > { %s3026_s7 = scalar_lea.vmem %s4376_s0, %s2700_s30  ;;  %s2934_s30 = smov 28  }
  0x1f   : > { %v3029_v0 = vld [vmem:[%s3026_s7 + $0x10] sm:$0xff]   ;;  %v3032_v1 = vld [vmem:[%s3026_s7 + $0x18] sm:$0xff]   ;;  %v3044_v5 = vld [vmem:[%s3026_s7] sm:$0xff]  }
  0x20   : > { %v3035_v2 = vshll.u32 %v3029_v0, 16  ;;  %v3038_v3 = vshrl.u32 %v3029_v0, 16  ;;  %v3041_v4 = vshll.u32 %v3032_v1, 16  ;;  %4410 = vst [vmem:[#allocation8_spill] sm:$0xff] %v3044_v5  ;;  %v3047_v6 = vld [vmem:[%s3026_s7 + $0x8] sm:$0xff]   ;;  %v3050_v7 = vshrl.u32 %v3032_v1, 16 }
  0x21   : > { %v390_v10 = vshrl.u32 %v3044_v5, 16  ;;  %v392_v11 = vshll.u32 %v3044_v5, 16  ;;  %v3057_v12 = vld [vmem:[%s3026_s7 + $0x20] sm:$0xff]   ;;  %v3060_v13 = vld [vmem:[%s3026_s7 + $0x28] sm:$0xff]   ;;  %v4381_v14 = vshll.u32 %v3047_v6, 16  ;;  %v4382_v15 = vshrl.u32 %v3047_v6, 16 }
  0x22   : > { %v407_v8 = vrot.slane %v3035_v2, 1  ;;  %v415_v9 = vrot.slane %v3041_v4, 1  ;;  %v3067_v19 = vshll.u32 %v3057_v12, 16  ;;  %v3072_v21 = vld [vmem:[%s3026_s7 + $0x30] sm:$0xff]   ;;  %v3075_v22 = vshll.u32 %v3060_v13, 16  ;;  %v3084_v25 = vld [vmem:[%s3026_s7 + $0x38] sm:$0xff]  }
  0x23   : > { %v394_v17 = vrot.slane %v392_v11, 1  ;;  %v399_v20 = vrot.slane %v4381_v14, 1  ;;  %v3078_v23 = vshrl.u32 %v3060_v13, 16  ;;  %v3081_v24 = vshrl.u32 %v3057_v12, 16  ;;  %v3089_v29 = vld [vmem:[%s3026_s7 + $0x40] sm:$0xff]   ;;  %v3104_v36 = vld [vmem:[%s3026_s7 + $0x48] sm:$0xff]  }
  0x24   : > { %v411_v16 = vor.u32 %v3038_v3, %v407_v8  ;;  %v419_v18 = vor.u32 %v3050_v7, %v415_v9  ;;  %v423_v28 = vrot.slane %v3067_v19, 1  ;;  %v431_v31 = vrot.slane %v3075_v22, 1  ;;  %v3122_v45 = vld [vmem:[%s3026_s7 + $0x50] sm:$0xff]   ;;  %v3132_v48 = vld [vmem:[%s3026_s7 + $0x58] sm:$0xff]   ;;  %v3146_v55 = vld [vmem:[%s3026_s7 + $0x60] sm:$0xff]  }
  0x25   : > { %v395_v27 = vor.u32 %v394_v17, %v390_v10  ;;  %v403_v30 = vor.u32 %v4382_v15, %v399_v20  ;;  %v3096_v32 = vshll.u32 %v3072_v21, 16  ;;  %v3101_v35 = vshll.u32 %v3084_v25, 16  ;;  %v3152_v57 = vld [vmem:[%s3026_s7 + $0x68] sm:$0xff]   ;;  %v3160_v61 = vld [vmem:[%s3026_s7 + $0x70] sm:$0xff]  }
  0x26   : > { %v416_v26 = vsel %vm388_vm0, %v411_v16, %v415_v9  ;;  %v424_v34 = vsel %vm388_vm0, %v419_v18, %v423_v28  ;;  %v435_v37 = vor.u32 %v3078_v23, %v431_v31  ;;  %v427_v39 = vor.u32 %v3081_v24, %v423_v28 }
  0x27   : > { %541 = vrot.lane.b32.xlu1 %v416_v26, %s2928_s8  ;;  %v400_v33 = vsel %vm388_vm0, %v395_v27, %v399_v20  ;;  %v439_v38 = vrot.slane %v3096_v32, 1  ;;  %v3111_v40 = vshrl.u32 %v3084_v25, 16  ;;  %v408_v41 = vsel %vm388_vm0, %v403_v30, %v407_v8  ;;  %v3184_v27 = vld [vmem:[%s3026_s7 + $0x78] sm:$0xff]  }
  0x28   : > { %537 = vrot.lane.b32.xlu0 %v400_v33, %s2928_s8  ;;  %v447_v42 = vrot.slane %v3101_v35, 1  ;;  %v3116_v43 = vshll.u32 %v3089_v29, 16  ;;  %v3119_v44 = vshrl.u32 %v3072_v21, 16  ;;  %v3126_v46 = vshll.u32 %v3104_v36, 16  ;;  %4411 = vst [vmem:[#allocation9_spill] sm:$0xff] %v3184_v27 }
  0x29   : > { %v3129_v47 = vshrl.u32 %v3104_v36, 16  ;;  %v440_v49 = vsel %vm388_vm0, %v435_v37, %v439_v38  ;;  %v3138_v52 = vshll.u32 %v3122_v45, 16  ;;  %v3143_v54 = vshrl.u32 %v3089_v29, 16 }
  0x2a   : > { %v451_v50 = vor.u32 %v3111_v40, %v447_v42  ;;  %v455_v51 = vrot.slane %v3116_v43, 1  ;;  %v463_v53 = vrot.slane %v3126_v46, 1  ;;  %v3149_v56 = vshll.u32 %v3132_v48, 16 }
  0x2b   : > { %543 = vrot.lane.b32.xlu1 %v424_v34, %s2928_s8  ;;  %v432_v58 = vsel %vm388_vm0, %v427_v39, %v431_v31  ;;  %v443_v59 = vor.u32 %v3119_v44, %v439_v38  ;;  %v3157_v60 = vshrl.u32 %v3132_v48, 16  ;;  %v3165_v63 = vshll.u32 %v3146_v55, 16  ;;  %v3194_v34 = vld [vmem:[%s3026_s7 + $0x80] sm:$0xff]   ;;  %v3200_v38 = vld [vmem:[%s3026_s7 + $0x88] sm:$0xff]   ;;  %v3204_v39 = vld [vmem:[%s3026_s7 + $0x90] sm:$0xf] }
  0x2c   : > { %539 = vrot.lane.b32.xlu0 %v408_v41, %s2928_s8  ;;  %v479_v62 = vrot.slane %v3149_v56, 1  ;;  %v456_v8 = vsel %vm388_vm0, %v451_v50, %v455_v51  ;;  %v467_v9 = vor.u32 %v3129_v47, %v463_v53  ;;  %v471_v10 = vrot.slane %v3138_v52, 1  ;;  %4413 = vst [vmem:[#allocation11_spill] sm:$0xff] %v3194_v34  ;;  %4415 = vst [vmem:[#allocation13_spill] sm:$0xff] %v3200_v38 }
  0x2d   : > { %v3171_v11 = vshll.u32 %v3152_v57, 16  ;;  %v3175_v16 = vshrl.u32 %v3122_v45, 16  ;;  %v448_v17 = vsel %vm388_vm0, %v443_v59, %v447_v42  ;;  %v459_v18 = vor.u32 %v3143_v54, %v455_v51  ;;  %4416 = vst [vmem:[#allocation14_spill] sm:$0xff] %v3204_v39 }
  0x2e   : > { %v487_v20 = vrot.slane %v3165_v63, 1  ;;  %v3181_v26 = vshrl.u32 %v3152_v57, 16  ;;  %v483_v28 = vor.u32 %v3157_v60, %v479_v62  ;;  %v3190_v31 = vshll.u32 %v3160_v61, 16 }
  0x2f   : > { %547 = vrot.lane.b32.xlu1 %v440_v49, %s2928_s8  ;;  %v495_v30 = vrot.slane %v3171_v11, 1  ;;  %v472_v33 = vsel %vm388_vm0, %v467_v9, %v471_v10  ;;  %v3197_v37 = vshll.u32 %v3184_v27, 16  ;;  %v464_v41 = vsel %vm388_vm0, %v459_v18, %v463_v53 }
  0x30   : > { %545 = vrot.lane.b32.xlu0 %v432_v58, %s2928_s8  ;;  %4412 = vst [vmem:[#allocation10_spill] sm:$0xff] %v3190_v31  ;;  %v475_v42 = vor.u32 %v3175_v16, %v471_v10  ;;  %v3209_v49 = vshrl.u32 %v3146_v55, 16  ;;  %v488_v50 = vsel %vm388_vm0, %v483_v28, %v487_v20  ;;  %v503_v58 = vrot.slane %v3190_v31, 1 }
  0x31   : > { %4414 = vst [vmem:[#allocation12_spill] sm:$0xff] %v3197_v37  ;;  %v499_v51 = vor.u32 %v3181_v26, %v495_v30  ;;  %v3216_v59 = vshrl.u32 %v3184_v27, 16  ;;  %v3220_v53 = vshll.u32 %v3194_v34, 16  ;;  %v3224_v9 = vcombine.low %v3204_v39, %v3204_v39 }
  0x32   : > { %v3227_v10 = vshll.u32 %v3200_v38, 16  ;;  %v491_v18 = vor.u32 %v3209_v49, %v487_v20  ;;  %v3233_v28 = vshrl.u32 %v3160_v61, 16  ;;  %v3238_v14 = vshrl.u32 %v3200_v38, 16 }
  0x33   : > { %551 = vrot.lane.b32.xlu1 %v456_v8, %s2928_s8  ;;  %4417 = vst [vmem:[#allocation15_spill] sm:$0xff] %v3216_v59  ;;  %v511_v8 = vrot.slane %v3197_v37, 1  ;;  %4418 = vst [vmem:[#allocation16_spill] sm:$0xff] %v3220_v53  ;;  %v519_v39 = vrot.slane %v3220_v53, 1 }
  0x34   : > { %549 = vrot.lane.b32.xlu0 %v448_v17, %s2928_s8  ;;  %4419 = vst [vmem:[#allocation17_spill] sm:$0xff] %v3224_v9  ;;  %4420 = vst [vmem:[#allocation18_spill] sm:$0xff] %v3227_v10  ;;  %v480_v17 = vsel %vm388_vm0, %v475_v42, %v479_v62  ;;  %v533_v62 = vshll.u32 %v3224_v9, 16  ;;  %v496_v20 = vsel %vm388_vm0, %v491_v18, %v495_v30  ;;  %v698_v30 = vrot.slane %v3035_v2, 2 }
  0x35   : > { %4421 = vst [vmem:[#allocation19_spill] sm:$0xff] %v3233_v28  ;;  %4422 = vst [vmem:[#allocation20_spill] sm:$0xff] %v3238_v14  ;;  %v515_v15 = vor.u32 %v3216_v59, %v511_v8  ;;  %v507_v42 = vor.u32 %v3233_v28, %v503_v58  ;;  %v599_v28 = vrot.slane %v3152_v57, 1 }
  0x36   : > { %v535_v53 = vrot.slane %v533_v62, 1  ;;  %v4425_v62 = vshll.u32 %v3047_v6, 16 }
  0x37   : > { %555 = vrot.lane.b32.xlu1 %v472_v33, %s2928_s8  ;;  %v504_v33 = vsel %vm388_vm0, %v499_v51, %v503_v58  ;;  %v520_v51 = vsel %vm388_vm0, %v515_v15, %v519_v39  ;;  %v701_v58 = vrot.slane %v3050_v7, 1  ;;  %v512_v18 = vsel %vm388_vm0, %v507_v42, %v511_v8 }
  0x38   : > { %553 = vrot.lane.b32.xlu0 %v464_v41, %s2928_s8  ;;  %v527_v41 = vrot.slane %v3227_v10, 1  ;;  %v697_v10 = vrot.slane %v3038_v3, 1  ;;  %v4424_v15 = vshrl.u32 %v3047_v6, 16  ;;  %v939_v8 = vrot.slane %v3050_v7, 2 }
  0x39   : > { %v574_v42 = vrot.slane %v3044_v5, 1  ;;  %v944_v7 = vrot.slane %v3067_v19, 3 }
  0x3a   : > { %v531_v38 = vor.u32 %v3238_v14, %v527_v41  ;;  %v694_v9 = vrot.slane %v4424_v15, 1  ;;  %v695_v14 = vrot.slane %v4425_v62, 2  ;;  %v699_v37 = vor.u32 %v698_v30, %v697_v10 }
  0x3b   : > { %559 = vrot.lane.b32.xlu1 %v488_v50, %s2928_s8  ;;  %v3248_v50 = vshrl.u32 %v3194_v34, 16  ;;  %v577_v34 = vrot.slane %v3029_v0, 1 }
  0x3c   : > { %557 = vrot.lane.b32.xlu0 %v480_v17, %s2928_s8  ;;  %v702_v17 = vrot.slane %v3041_v4, 2  ;;  %v536_v27 = vsel %vm388_vm0, %v531_v38, %v535_v53  ;;  %v696_v31 = vor.u32 %v695_v14, %v694_v9  ;;  %v581_v38 = vrot.slane %v3057_v12, 1 }
  0x3d   : > { %4423 = vst [vmem:[#allocation21_spill] sm:$0xff] %v3248_v50  ;;  %v936_v53 = vrot.slane %v3038_v3, 2  ;;  %v937_v9 = vrot.slane %v3035_v2, 3  ;;  %v583_v3 = vrot.slane %v3060_v13, 1 }
  0x3e   : > { %v703_v59 = vor.u32 %v702_v17, %v701_v58  ;;  %v3278_v30 = vsel %vm693_vm2, %v696_v31, %v699_v37  ;;  %v705_v31 = vrot.slane %v3081_v24, 1 }
  0x3f   : > { %563 = vrot.lane.b32.xlu1 %v504_v33, %s2928_s8  ;;  %v523_v33 = vor.u32 %v3248_v50, %v519_v39  ;;  %v940_v39 = vrot.slane %v3041_v4, 3  ;;  %v579_v4 = vrot.slane %v3032_v1, 1  ;;  %v938_v17 = vor.u32 %v937_v9, %v936_v53 }
  0x40   : > { %561 = vrot.lane.b32.xlu0 %v496_v20, %s2928_s8  ;;  %v575_v20 = vrot.slane %v3047_v6, 1  ;;  %v3273_v15 = vsel %vm693_vm2, %v699_v37, %v703_v59  ;;  %v706_v37 = vrot.slane %v3067_v19, 2  ;;  %v713_v9 = vrot.slane %v3119_v44, 1 }
  0x41   : > { %v528_v10 = vsel %vm388_vm0, %v523_v33, %v527_v41  ;;  %v941_v14 = vor.u32 %v940_v39, %v939_v8  ;;  %v3302_v19 = vsel %vm573_vm1, %v579_v4, %v581_v38  ;;  %v947_v39 = vrot.slane %v3078_v23, 2 }
  0x42   : > { %v3287_v58 = vsel %vm573_vm1, %v575_v20, %v577_v34  ;;  %v576_v33 = vsel %vm573_vm1, %v574_v42, %v575_v20  ;;  %v707_v62 = vor.u32 %v706_v37, %v705_v31  ;;  %v585_v20 = vrot.slane %v3072_v21, 1 }
  0x43   : > { %567 = vrot.lane.b32.xlu1 %v520_v51, %s2928_s8  ;;  %v943_v51 = vrot.slane %v3081_v24, 2  ;;  %v3305_v24 = vsel %vm935_vm3, %v938_v17, %v941_v14  ;;  %v3320_v53 = vsel %vm573_vm1, %v577_v34, %v579_v4  ;;  %v717_v37 = vrot.slane %v3111_v40, 1 }
  0x44   : > { %565 = vrot.lane.b32.xlu0 %v512_v18, %s2928_s8  ;;  %v710_v18 = vrot.slane %v3075_v22, 2  ;;  %v3310_v42 = vsel %vm693_vm2, %v703_v59, %v707_v62  ;;  %v714_v59 = vrot.slane %v3096_v32, 2  ;;  %v718_v17 = vrot.slane %v3101_v35, 2 }
  0x45   : > { %v945_v41 = vor.u32 %v944_v7, %v943_v51  ;;  %v948_v51 = vrot.slane %v3075_v22, 3  ;;  %v587_v22 = vrot.slane %v3084_v25, 1  ;;  %v589_v34 = vrot.slane %v3089_v29, 1 }
  0x47   : > { %571 = vrot.lane.b32.xlu1 %v536_v27, %s2928_s8  ;;  %v709_v27 = vrot.slane %v3078_v23, 1  ;;  %v3297_v2 = vsel %vm935_vm3, %v941_v14, %v945_v41  ;;  %v952_v14 = vrot.slane %v3096_v32, 3  ;;  %v949_v23 = vor.u32 %v948_v51, %v947_v39 }
  0x48   : > { %569 = vrot.lane.b32.xlu0 %v528_v10, %s2928_s8  ;;  %v951_v10 = vrot.slane %v3119_v44, 2  ;;  %v715_v44 = vor.u32 %v714_v59, %v713_v9  ;;  %v956_v51 = vrot.slane %v3101_v35, 3  ;;  %v721_v35 = vrot.slane %v3143_v54, 1 }
  0x49   : > { %v711_v8 = vor.u32 %v710_v18, %v709_v27  ;;  %v3330_v27 = vsel %vm573_vm1, %v583_v3, %v585_v20  ;;  %v3334_v4 = vsel %vm935_vm3, %v945_v41, %v949_v23  ;;  %v719_v18 = vor.u32 %v718_v17, %v717_v37 }
  0x4a   : > { %v953_v31 = vor.u32 %v952_v14, %v951_v10  ;;  %v959_v41 = vrot.slane %v3143_v54, 2  ;;  %v591_v10 = vrot.slane %v3104_v36, 1  ;;  %v593_v14 = vrot.slane %v3122_v45, 1 }
  0x4b   : > { %613 = vrot.lane.b32.xlu1 %v3287_v58, %s2929_s9  ;;  %v3316_v7 = vsel %vm693_vm2, %v707_v62, %v711_v8  ;;  %v3343_v62 = vsel %vm573_vm1, %v581_v38, %v583_v3  ;;  %v3346_v39 = vsel %vm693_vm2, %v711_v8, %v715_v44  ;;  %v3359_v38 = vsel %vm573_vm1, %v587_v22, %v589_v34 }
  0x4c   : > { %611 = vrot.lane.b32.xlu0 %v576_v33, %s2929_s9  ;;  %v3339_v32 = vsel %vm935_vm3, %v949_v23, %v953_v31  ;;  %v955_v33 = vrot.slane %v3111_v40, 2  ;;  %v3355_v23 = vsel %vm693_vm2, %v715_v44, %v719_v18  ;;  %v960_v40 = vrot.slane %v3116_v43, 3 }
  0x4d   : > { %v722_v8 = vrot.slane %v3116_v43, 2  ;;  %v725_v59 = vrot.slane %v3129_v47, 1  ;;  %v726_v37 = vrot.slane %v3126_v46, 2  ;;  %v3368_v17 = vsel %vm573_vm1, %v585_v20, %v587_v22 }
  0x4e   : > { %v957_v3 = vor.u32 %v956_v51, %v955_v33  ;;  %v961_v9 = vor.u32 %v960_v40, %v959_v41  ;;  %v595_v43 = vrot.slane %v3132_v48, 1  ;;  %v597_v54 = vrot.slane %v3146_v55, 1 }
  0x4f   : > { %617 = vrot.lane.b32.xlu1 %v3302_v19, %s2929_s9  ;;  %v723_v50 = vor.u32 %v722_v8, %v721_v35  ;;  %v727_v51 = vor.u32 %v726_v37, %v725_v59  ;;  %v3381_v41 = vsel %vm573_vm1, %v591_v10, %v593_v14  ;;  %v963_v22 = vrot.slane %v3129_v47, 2 }
  0x50   : > { %615 = vrot.lane.b32.xlu0 %v3320_v53, %s2929_s9  ;;  %v3371_v44 = vsel %vm935_vm3, %v953_v31, %v957_v3  ;;  %v3378_v33 = vsel %vm935_vm3, %v957_v3, %v961_v9  ;;  %v964_v31 = vrot.slane %v3126_v46, 3  ;;  %v967_v3 = vrot.slane %v3175_v16, 2 }
  0x51   : > { %v3384_v20 = vsel %vm693_vm2, %v719_v18, %v723_v50  ;;  %v3391_v40 = vsel %vm693_vm2, %v723_v50, %v727_v51  ;;  %v968_v35 = vrot.slane %v3138_v52, 3  ;;  %v3396_v8 = vsel %vm573_vm1, %v589_v34, %v591_v10 }
  0x52   : > { %v965_v59 = vor.u32 %v964_v31, %v963_v22  ;;  %v729_v18 = vrot.slane %v3175_v16, 1  ;;  %v730_v47 = vrot.slane %v3138_v52, 2  ;;  %v733_v37 = vrot.slane %v3157_v60, 1 }
  0x53   : > { %621 = vrot.lane.b32.xlu1 %v3330_v27, %s2929_s9  ;;  %v969_v46 = vor.u32 %v968_v35, %v967_v3  ;;  %v734_v50 = vrot.slane %v3149_v56, 2  ;;  %v3405_v5 = vsel %vm573_vm1, %v595_v43, %v597_v54  ;;  %v3418_v31 = vsel %vm573_vm1, %v593_v14, %v595_v43 }
  0x54   : > { %619 = vrot.lane.b32.xlu0 %v3343_v62, %s2929_s9  ;;  %v3410_v10 = vsel %vm935_vm3, %v961_v9, %v965_v59  ;;  %v731_v52 = vor.u32 %v730_v47, %v729_v18  ;;  %v971_v3 = vrot.slane %v3157_v60, 2  ;;  %v972_v35 = vrot.slane %v3149_v56, 3 }
  0x55   : > { %v3415_v16 = vsel %vm935_vm3, %v965_v59, %v969_v46  ;;  %v735_v22 = vor.u32 %v734_v50, %v733_v37  ;;  %v975_v34 = vrot.slane %v3209_v49, 2  ;;  %v976_v18 = vrot.slane %v3165_v63, 3 }
  0x56   : > { %v3429_v59 = vsel %vm693_vm2, %v727_v51, %v731_v52  ;;  %v4426_v14 = vrot.slane %v3160_v61, 1  ;;  %v973_v60 = vor.u32 %v972_v35, %v971_v3  ;;  %v737_v47 = vrot.slane %v3209_v49, 1 }
  0x57   : > { %625 = vrot.lane.b32.xlu1 %v3359_v38, %s2929_s9  ;;  %v3426_v9 = vsel %vm693_vm2, %v731_v52, %v735_v22  ;;  %v977_v56 = vor.u32 %v976_v18, %v975_v34  ;;  %v3441_v37 = vsel %vm573_vm1, %v597_v54, %v599_v28  ;;  %v738_v50 = vrot.slane %v3165_v63, 2  ;;  %v2794_v63 = vld [vmem:[%s4377_s1] sm:$0xff]  }
  0x58   : > { %623 = vrot.lane.b32.xlu0 %v3368_v17, %s2929_s9  ;;  %v3435_v43 = vsel %vm573_vm1, %v599_v28, %v4426_v14  ;;  %v3444_v51 = vsel %vm935_vm3, %v969_v46, %v973_v60  ;;  %v741_v3 = vrot.slane %v3181_v26, 1  ;;  %v742_v34 = vrot.slane %v3171_v11, 2  ;;  %2651 = vmatprep.subr.bf16.mxu0 %v2794_v63 }
  0x59   : > { %v3450_v52 = vsel %vm935_vm3, %v973_v60, %v977_v56  ;;  %v739_v35 = vor.u32 %v738_v50, %v737_v47  ;;  %v817_v46 = vrot.slane %v3029_v0, 2  ;;  %v819_v18 = vrot.slane %v3032_v1, 2  ;;  %2652 = vmatpush3.bf16.msra.mxu0 %v2794_v63  ;;  %2693 = vmatprep.subr.bf16.mxu1 %v2794_v63  ;;  %v2796_v50 = vld [vmem:[%s4377_s1 + $0x10] sm:$0xff]  }
  0x5a   : > { %v3456_v49 = vor.u32 %v742_v34, %v741_v3  ;;  %2696 = vmatpush3.bf16.msra.mxu1 %v2794_v63  ;;  %v821_v60 = vrot.slane %v3057_v12, 2  ;;  %v980_v47 = vrot.slane %v3171_v11, 3  ;;  %v1061_v34 = vrot.slane %v3057_v12, 3 }
  0x5b   : > { %629 = vrot.lane.b32.xlu1 %v3381_v41, %s2929_s9  ;;  %v3462_v28 = vsel %vm693_vm2, %v735_v22, %v739_v35  ;;  %v2795_v22 = vld [vmem:[%s4377_s1 + $0x8] sm:$0xff]   ;;  %v820_v14 = vsel %vm815_vm4, %v817_v46, %v819_v18  ;;  %v825_v12 = vrot.slane %v3072_v21, 2 }
  0x5c   : > { %627 = vrot.lane.b32.xlu0 %v3396_v8, %s2929_s9  ;;  %v3468_v54 = vsel %vm693_vm2, %v739_v35, %v3456_v49  ;;  %2653 = vmatprep.subr.bf16.mxu0 %v2795_v22  ;;  %v1058_v35 = vrot.slane %v3029_v0, 3  ;;  %v823_v0 = vrot.slane %v3060_v13, 2 }
  0x5d   : > { %2654 = vmatpush3.bf16.msra.mxu0 %v2795_v22  ;;  %2694 = vmatprep.subr.bf16.mxu1 %v2795_v22 }
  0x5e   : > { %2697 = vmatpush3.bf16.msra.mxu1 %v2795_v22  ;;  %2655 = vmatprep.subr.bf16.mxu0 %v2796_v50  ;;  %v1067_v22 = vrot.slane %v3084_v25, 3 }
  0x5f   : > { %633 = vrot.lane.b32.xlu1 %v3405_v5, %s2929_s9  ;;  %2695 = vmatprep.subr.bf16.mxu1 %v2796_v50 }
  0x60   : > { %631 = vrot.lane.b32.xlu0 %v3418_v31, %s2929_s9 }
  0x61   : > { %2656 = vmatpush3.bf16.msra.mxu0 %v2796_v50 }
  0x62   : > { %2698 = vmatpush3.bf16.msra.mxu1 %v2796_v50 }
  0x63   : > { %637 = vrot.lane.b32.xlu1 %v3435_v43, %s2929_s9 }
  0x64   : > { %635 = vrot.lane.b32.xlu0 %v3441_v37, %s2929_s9 }
  0x67   : > { %659 = vrot.lane.b32.xlu1 %v3320_v53, %s2930_s12  ;;  %v816_v53 = vrot.slane %v3047_v6, 2 }
  0x68   : > { %657 = vrot.lane.b32.xlu0 %v3287_v58, %s2930_s12  ;;  %v979_v58 = vrot.slane %v3181_v26, 2  ;;  %v822_v26 = vsel %vm815_vm4, %v819_v18, %v821_v60 }
  0x6a   : > { %v3490_v3 = vor.u32 %v980_v47, %v979_v58 }
  0x6b   : > { %781 = vrot.lane.b32.xlu1 %v3273_v15, %s2931_s21  ;;  %v818_v15 = vsel %vm815_vm4, %v816_v53, %v817_v46 }
  0x6c   : > { %779 = vrot.lane.b32.xlu0 %v3278_v30, %s2931_s21  ;;  %v3496_v11 = vsel %vm935_vm3, %v977_v56, %v3490_v3  ;;  %v1059_v30 = vrot.slane %v3032_v1, 3  ;;  %v824_v1 = vsel %vm815_vm4, %v821_v60, %v823_v0 }
  0x6e   : > { %v1062_v56 = vsel %vm1057_vm5, %v1059_v30, %v1061_v34  ;;  %v1060_v63 = vsel %vm1057_vm5, %v1058_v35, %v1059_v30  ;;  %v833_v30 = vrot.slane %v3122_v45, 2 }
  0x6f   : > { %855 = vrot.lane.b32.xlu1 %v820_v14, %s2932_s26 }
  0x70   : > { %853 = vrot.lane.b32.xlu0 %v818_v15, %s2932_s26 }
  0x73   : > { %901 = vrot.lane.b32.xlu1 %v822_v26, %s2933_s29 }
  0x74   : > { %899 = vrot.lane.b32.xlu0 %v820_v14, %s2933_s29 }
  0x77   : > { %1023 = vrot.lane.b32.xlu1 %v3297_v2, %s2934_s30  ;;  %v826_v2 = vsel %vm815_vm4, %v823_v0, %v825_v12 }
  0x78   : > { %1021 = vrot.lane.b32.xlu0 %v3305_v24, %s2934_s30  ;;  %v1065_v24 = vrot.slane %v3072_v21, 3 }
  0x7b   : > { %1097 = vrot.lane.b32.xlu1 %v1062_v56, %s2935_s5  ;;  %v1071_v56 = vrot.slane %v3104_v36, 3 }
  0x7c   : > { %1095 = vrot.lane.b32.xlu0 %v1060_v63, %s2935_s5 }
  0x7f   : > { %663 = vrot.lane.b32.xlu1 %v3343_v62, %s2930_s12  ;;  %v829_v62 = vrot.slane %v3089_v29, 2 }
  0x80   : > { %661 = vrot.lane.b32.xlu0 %v3302_v19, %s2930_s12  ;;  %v1063_v19 = vrot.slane %v3060_v13, 3  ;;  %v827_v13 = vrot.slane %v3084_v25, 2  ;;  %v1068_v25 = vsel %vm1057_vm5, %v1065_v24, %v1067_v22 }
  0x83   : > { %785 = vrot.lane.b32.xlu1 %v3316_v7, %s2931_s21  ;;  %v1066_v7 = vsel %vm1057_vm5, %v1063_v19, %v1065_v24 }
  0x84   : > { %783 = vrot.lane.b32.xlu0 %v3310_v42, %s2931_s21  ;;  %v1064_v42 = vsel %vm1057_vm5, %v1061_v34, %v1063_v19 }
  0x87   : > { %859 = vrot.lane.b32.xlu1 %v824_v1, %s2932_s26 }
  0x88   : > { %857 = vrot.lane.b32.xlu0 %v822_v26, %s2932_s26 }
  0x8b   : > { %905 = vrot.lane.b32.xlu1 %v826_v2, %s2933_s29 }
  0x8c   : > { %903 = vrot.lane.b32.xlu0 %v824_v1, %s2933_s29 }
  0x8f   : > { %1027 = vrot.lane.b32.xlu1 %v3339_v32, %s2934_s30 }
  0x90   : > { %1025 = vrot.lane.b32.xlu0 %v3334_v4, %s2934_s30  ;;  %v828_v4 = vsel %vm815_vm4, %v825_v12, %v827_v13 }
  0x93   : > { %1101 = vrot.lane.b32.xlu1 %v1066_v7, %s2935_s5 }
  0x94   : > { %1099 = vrot.lane.b32.xlu0 %v1064_v42, %s2935_s5 }
  0x97   : > { %667 = vrot.lane.b32.xlu1 %v3368_v17, %s2930_s12 }
  0x98   : > { %665 = vrot.lane.b32.xlu0 %v3330_v27, %s2930_s12  ;;  %v830_v27 = vsel %vm815_vm4, %v827_v13, %v829_v62  ;;  %v837_v13 = vrot.slane %v3146_v55, 2 }
  0x99   : > { %v3543_v21 = vpop.permute.xlu1 %541 }
  0x9a   : > { %v3545_v32 = vpop.permute.xlu0 %537 }
  0x9b   : > { %789 = vrot.lane.b32.xlu1 %v3355_v23, %s2931_s21 }
  0x9c   : > { %787 = vrot.lane.b32.xlu0 %v3346_v39, %s2931_s21  ;;  %v1069_v39 = vrot.slane %v3089_v29, 3 }
  0x9d   : > { %v3553_v17 = vpop.permute.xlu1 %543 }
  0x9e   : > { %v3555_v46 = vpop.permute.xlu0 %539  ;;  %v1070_v60 = vsel %vm1057_vm5, %v1067_v22, %v1069_v39 }
  0x9f   : > { %863 = vrot.lane.b32.xlu1 %v828_v4, %s2932_s26 }
  0xa0   : > { %861 = vrot.lane.b32.xlu0 %v826_v2, %s2932_s26 }
  0xa1   : > { %v3560_v18 = vpop.permute.xlu1 %547 }
  0xa2   : > { %v3562_v23 = vpop.permute.xlu0 %545 }
  0xa3   : > { %909 = vrot.lane.b32.xlu1 %v830_v27, %s2933_s29 }
  0xa4   : > { %907 = vrot.lane.b32.xlu0 %v828_v4, %s2933_s29 }
  0xa5   : > { %v3568_v53 = vpop.permute.xlu1 %551 }
  0xa6   : > { %v3570_v14 = vpop.permute.xlu0 %549 }
  0xa7   : > { %1031 = vrot.lane.b32.xlu1 %v3378_v33, %s2934_s30  ;;  %v831_v33 = vrot.slane %v3104_v36, 2  ;;  %v1072_v36 = vsel %vm1057_vm5, %v1069_v39, %v1071_v56 }
  0xa8   : > { %1029 = vrot.lane.b32.xlu0 %v3371_v44, %s2934_s30 }
  0xa9   : > { %v3577_v58 = vpop.permute.xlu1 %555  ;;  %v832_v26 = vsel %vm815_vm4, %v829_v62, %v831_v33 }
  0xaa   : > { %v3580_v47 = vpop.permute.xlu0 %553 }
  0xab   : > { %1105 = vrot.lane.b32.xlu1 %v1070_v60, %s2935_s5 }
  0xac   : > { %1103 = vrot.lane.b32.xlu0 %v1068_v25, %s2935_s5 }
  0xad   : > { %v3584_v29 = vpop.permute.xlu1 %559 }
  0xae   : > { %v3586_v50 = vpop.permute.xlu0 %557 }
  0xaf   : > { %671 = vrot.lane.b32.xlu1 %v3396_v8, %s2930_s12 }
  0xb0   : > { %669 = vrot.lane.b32.xlu0 %v3359_v38, %s2930_s12  ;;  %v834_v38 = vsel %vm815_vm4, %v831_v33, %v833_v30 }
  0xb1   : > { %v3593_v44 = vpop.permute.xlu1 %563 }
  0xb2   : > { %v3595_v15 = vpop.permute.xlu0 %561 }
  0xb3   : > { %793 = vrot.lane.b32.xlu1 %v3391_v40, %s2931_s21 }
  0xb4   : > { %791 = vrot.lane.b32.xlu0 %v3384_v20, %s2931_s21  ;;  %v1073_v20 = vrot.slane %v3122_v45, 3 }
  0xb5   : > { %v3603_v8 = vpop.permute.xlu1 %567 }
  0xb6   : > { %v3605_v34 = vpop.permute.xlu0 %565  ;;  %v1074_v1 = vsel %vm1057_vm5, %v1071_v56, %v1073_v20 }
  0xb7   : > { %867 = vrot.lane.b32.xlu1 %v832_v26, %s2932_s26 }
  0xb8   : > { %865 = vrot.lane.b32.xlu0 %v830_v27, %s2932_s26  ;;  %v1075_v27 = vrot.slane %v3132_v48, 3 }
  0xb9   : > { %v3610_v35 = vpop.permute.xlu1 %571 }
  0xba   : > { %v3612_v40 = vpop.permute.xlu0 %569 }
  0xbb   : > { %913 = vrot.lane.b32.xlu1 %v834_v38, %s2933_s29 }
  0xbc   : > { %911 = vrot.lane.b32.xlu0 %v832_v26, %s2933_s29 }
  0xbd   : > { %v3618_v63 = vpop.permute.xlu1 %613 }
  0xbe   : > { %v3620_v0 = vpop.permute.xlu0 %611 }
  0xbf   : > { %1035 = vrot.lane.b32.xlu1 %v3415_v16, %s2934_s30  ;;  %v835_v16 = vrot.slane %v3132_v48, 2  ;;  %v1076_v48 = vsel %vm1057_vm5, %v1073_v20, %v1075_v27  ;;  %v841_v20 = vrot.slane %v3160_v61, 2 }
  0xc0   : > { %1033 = vrot.lane.b32.xlu0 %v3410_v10, %s2934_s30  ;;  %v2936_v10 = vmov 0  }
  0xc1   : > { %v3627_v12 = vpop.permute.xlu1 %617  ;;  %2773 = vset.pattern.permute.xlu1 %v2936_v10  ;;  %2772 = vset.pattern.permute.xlu0 %v2936_v10  ;;  %v836_v42 = vsel %vm815_vm4, %v833_v30, %v835_v16 }
  0xc2   : > { %v3630_v2 = vpop.permute.xlu0 %615 }
  0xc3   : > { %1109 = vrot.lane.b32.xlu1 %v1074_v1, %s2935_s5  ;;  %v4427_v1 = vld [vmem:[#allocation19_spill] sm:$0xff] }
  0xc4   : > { %1107 = vrot.lane.b32.xlu0 %v1072_v36, %s2935_s5  ;;  %v983_v36 = vrot.slane %v4427_v1, 2 }
  0xc5   : > { %v3634_v45 = vpop.permute.xlu1 %621 }
  0xc6   : > { %v3636_v19 = vpop.permute.xlu0 %619 }
  0xc7   : > { %675 = vrot.lane.b32.xlu1 %v3418_v31, %s2930_s12 }
  0xc8   : > { %673 = vrot.lane.b32.xlu0 %v3381_v41, %s2930_s12  ;;  %v838_v41 = vsel %vm815_vm4, %v835_v16, %v837_v13  ;;  %v4428_v16 = vld [vmem:[#allocation10_spill] sm:$0xff] }
  0xc9   : > { %v3643_v24 = vpop.permute.xlu1 %625  ;;  %v984_v10 = vrot.slane %v4428_v16, 3 }
  0xca   : > { %v3645_v7 = vpop.permute.xlu0 %623 }
  0xcb   : > { %797 = vrot.lane.b32.xlu1 %v3426_v9, %s2931_s21 }
  0xcc   : > { %795 = vrot.lane.b32.xlu0 %v3429_v59, %s2931_s21  ;;  %v1077_v59 = vrot.slane %v3146_v55, 3 }
  0xcd   : > { %v3653_v31 = vpop.permute.xlu1 %629 }
  0xce   : > { %v3655_v4 = vpop.permute.xlu0 %627  ;;  %v1078_v60 = vsel %vm1057_vm5, %v1075_v27, %v1077_v59  ;;  %v4429_v27 = vld [vmem:[#allocation8_spill] sm:$0xff] }
  0xcf   : > { %871 = vrot.lane.b32.xlu1 %v836_v42, %s2932_s26 }
  0xd0   : > { %869 = vrot.lane.b32.xlu0 %v834_v38, %s2932_s26 }
  0xd1   : > { %v3660_v62 = vpop.permute.xlu1 %633 }
  0xd2   : > { %v3662_v9 = vpop.permute.xlu0 %631 }
  0xd3   : > { %917 = vrot.lane.b32.xlu1 %v838_v41, %s2933_s29 }
  0xd4   : > { %915 = vrot.lane.b32.xlu0 %v836_v42, %s2933_s29 }
  0xd5   : > { %v3668_v22 = vpop.permute.xlu1 %637 }
  0xd6   : > { %v3670_v39 = vpop.permute.xlu0 %635 }
  0xd7   : > { %1039 = vrot.lane.b32.xlu1 %v3450_v52, %s2934_s30  ;;  %v839_v52 = vrot.slane %v3152_v57, 2 }
  0xd8   : > { %1037 = vrot.lane.b32.xlu0 %v3444_v51, %s2934_s30 }
  0xd9   : > { %v660_v25 = vpop.permute.xlu1 %659  ;;  %v840_v56 = vsel %vm815_vm4, %v837_v13, %v839_v52  ;;  %v3704_v13 = vsel %vm815_vm4, %v839_v52, %v841_v20  ;;  %v1079_v52 = vrot.slane %v3152_v57, 3 }
  0xda   : > { %v658_v33 = vpop.permute.xlu0 %657 }
  0xdb   : > { %1113 = vrot.lane.b32.xlu1 %v1078_v60, %s2935_s5  ;;  %v1133_v60 = vsel %vm1131_vm7, %v4429_v27, %v3545_v32 }
  0xdc   : > { %1111 = vrot.lane.b32.xlu0 %v1076_v48, %s2935_s5 }
  0xdd   : > { %v782_v26 = vpop.permute.xlu1 %781 }
  0xde   : > { %v780_v30 = vpop.permute.xlu0 %779 }
  0xdf   : > { %679 = vrot.lane.b32.xlu1 %v3441_v37, %s2930_s12 }
  0xe0   : > { %677 = vrot.lane.b32.xlu0 %v3405_v5, %s2930_s12  ;;  %v1135_v5 = vsel %vm1131_vm7, %v3047_v6, %v3555_v46 }
  0xe1   : > { %v856_v38 = vpop.permute.xlu1 %855  ;;  %v1172_v42 = vsel %vm1168_vm6, %v1135_v5, %v3618_v63  ;;  %v1170_v63 = vsel %vm1168_vm6, %v1133_v60, %v3620_v0  ;;  %v746_v60 = vrot.slane %v4428_v16, 2 }
  0xe2   : > { %v854_v51 = vpop.permute.xlu0 %853  ;;  %v1209_v6 = vsel %vm1205_vm8, %v1172_v42, %v660_v25 }
  0xe3   : > { %801 = vrot.lane.b32.xlu1 %v3468_v54, %s2931_s21  ;;  %v1246_v48 = vsel %vm1242_vm9, %v1209_v6, %v782_v26 }
  0xe4   : > { %799 = vrot.lane.b32.xlu0 %v3462_v28, %s2931_s21  ;;  %v3706_v28 = vor.u32 %v984_v10, %v983_v36  ;;  %v1081_v36 = vrot.slane %v3160_v61, 3  ;;  %v1207_v10 = vsel %vm1205_vm8, %v1170_v63, %v658_v33  ;;  %v1283_v32 = vsel %vm1279_vm10, %v1246_v48, %v856_v38  ;;  %v4432_v48 = vld [vmem:[#allocation12_spill] sm:$0xff] }
  0xe5   : > { %v902_v37 = vpop.permute.xlu1 %901 }
  0xe6   : > { %v900_v54 = vpop.permute.xlu0 %899  ;;  %v1320_v25 = vsel %vm1316_vm11, %v1283_v32, %v902_v37  ;;  %v986_v0 = vsel %vm935_vm3, %v3490_v3, %v3706_v28 }
  0xe7   : > { %875 = vrot.lane.b32.xlu1 %v840_v56, %s2932_s26 }
  0xe8   : > { %873 = vrot.lane.b32.xlu0 %v838_v41, %s2932_s26  ;;  %v1244_v41 = vsel %vm1242_vm9, %v1207_v10, %v780_v30  ;;  %v1082_v30 = vsel %vm1057_vm5, %v1079_v52, %v1081_v36  ;;  %v750_v10 = vrot.slane %v4432_v48, 2 }
  0xe9   : > { %v1024_v46 = vpop.permute.xlu1 %1023  ;;  %v1281_v57 = vsel %vm1279_vm10, %v1244_v41, %v854_v51  ;;  %v4430_v51 = vld [vmem:[#allocation9_spill] sm:$0xff]  ;;  %v4433_v41 = vrot.slane %v3160_v61, 1  ;;  %v4438_v61 = vld [vmem:[#allocation20_spill] sm:$0xff] }
  0xea   : > { %v1022_v5 = vpop.permute.xlu0 %1021  ;;  %v1357_v26 = vsel %vm1353_vm12, %v1320_v25, %v1024_v46  ;;  %v1318_v38 = vsel %vm1316_vm11, %v1281_v57, %v900_v54  ;;  %v603_v27 = vrot.slane %v4430_v51, 1  ;;  %v4431_v46 = vld [vmem:[#allocation15_spill] sm:$0xff] }
  0xeb   : > { %921 = vrot.lane.b32.xlu1 %v3704_v13, %s2933_s29  ;;  %v1355_v37 = vsel %vm1353_vm12, %v1318_v38, %v1022_v5  ;;  %v749_v63 = vrot.slane %v4431_v46, 1 }
  0xec   : > { %919 = vrot.lane.b32.xlu0 %v840_v56, %s2933_s29  ;;  %v745_v56 = vrot.slane %v4427_v1, 1  ;;  %v1080_v1 = vsel %vm1057_vm5, %v1077_v59, %v1079_v52  ;;  %v843_v52 = vrot.slane %v4430_v51, 2 }
  0xed   : > { %v1098_v33 = vpop.permute.xlu1 %1097 }
  0xee   : > { %v1394_v42 = vsel %vm1390_vm13, %v1357_v26, %v1098_v33  ;;  %v1096_v3 = vpop.permute.xlu0 %1095  ;;  %v747_v25 = vor.u32 %v746_v60, %v745_v56  ;;  %v4435_v56 = vld [vmem:[#allocation16_spill] sm:$0xff] }
  0xef   : > { %1043 = vrot.lane.b32.xlu1 %v986_v0, %s2934_s30  ;;  %v1430_v54 = vsel %vm1427_vm14, %v1394_v42, 0  ;;  %v1392_v6 = vsel %vm1390_vm13, %v1355_v37, %v1096_v3  ;;  %v3760_v0 = vor.u32 %v750_v10, %v749_v63  ;;  %v987_v42 = vrot.slane %v4431_v46, 2  ;;  %v4434_v37 = vld [vmem:[#allocation21_spill] sm:$0xff] }
  0xf0   : > { %1041 = vrot.lane.b32.xlu0 %v3496_v11, %s2934_s30  ;;  %v1429_v32 = vsel %vm1427_vm14, %v1392_v6, 0  ;;  %v3758_v11 = vsel %vm573_vm1, %v4433_v41, %v603_v27  ;;  %v748_v33 = vsel %vm693_vm2, %v3456_v49, %v747_v25  ;;  %v991_v3 = vrot.slane %v4434_v37, 2  ;;  %v2800_v63 = vld [vmem:[%s3026_s7 + $0x18] sm:$0xff]   ;;  %v2801_v41 = vld [vmem:[%s3026_s7 + $0x10] sm:$0xff]  }
  0xf1   : > { %v664_v5 = vpop.permute.xlu1 %663  ;;  %2657 = vmatprep.mubr.msk.bf16.mxu0 %vm1471_vm15, %v1429_v32  ;;  %v752_v59 = vsel %vm693_vm2, %v747_v25, %v3760_v0  ;;  %v992_v60 = vrot.slane %v4435_v56, 3  ;;  %v1139_v46 = vsel %vm1131_vm7, %v2800_v63, %v3553_v17  ;;  %v1137_v25 = vsel %vm1131_vm7, %v2801_v41, %v3543_v21 }
  0xf2   : > { %2658 = vmatmul.mubr.msk.bf16.vlgmr.msra.gmra.mrb[0].mxu0 %vm1471_vm15, %v1430_v54  ;;  %v662_v16 = vpop.permute.xlu0 %661  ;;  %v4436_v54 = vld [vmem:[#allocation11_spill] sm:$0xff] }
  0xf3   : > { %1117 = vrot.lane.b32.xlu1 %v1082_v30, %s2935_s5  ;;  %v988_v30 = vrot.slane %v4432_v48, 3  ;;  %v845_v6 = vrot.slane %v4436_v54, 2  ;;  %v3786_v32 = vor.u32 %v992_v60, %v991_v3  ;;  %v1083_v3 = vrot.slane %v4430_v51, 3 }
  0xf4   : > { %1115 = vrot.lane.b32.xlu0 %v1080_v1, %s2935_s5  ;;  %v1176_v1 = vsel %vm1168_vm6, %v1139_v46, %v3627_v12 }
  0xf5   : > { %v786_v55 = vpop.permute.xlu1 %785  ;;  %v989_v48 = vor.u32 %v988_v30, %v987_v42  ;;  %v1213_v17 = vsel %vm1205_vm8, %v1176_v1, %v664_v5 }
  0xf6   : > { %v784_v57 = vpop.permute.xlu0 %783  ;;  %v1250_v12 = vsel %vm1242_vm9, %v1213_v17, %v786_v55 }
  0xf7   : > { %683 = vrot.lane.b32.xlu1 %v3758_v11, %s2930_s12  ;;  %v994_v21 = vsel %vm935_vm3, %v989_v48, %v3786_v32 }
  0xf8   : > { %681 = vrot.lane.b32.xlu0 %v3435_v43, %s2930_s12  ;;  %v844_v43 = vsel %vm815_vm4, %v841_v20, %v843_v52  ;;  %v3793_v20 = vsel %vm815_vm4, %v843_v52, %v845_v6 }
  0xf9   : > { %v860_v26 = vpop.permute.xlu1 %859 }
  0xfa   : > { %v858_v38 = vpop.permute.xlu0 %857  ;;  %v1287_v52 = vsel %vm1279_vm10, %v1250_v12, %v860_v26  ;;  %v291_v12 = vld [vmem:[%s3026_s7 + $0x94] sm:$0xf] }
  0xfb   : > { %805 = vrot.lane.b32.xlu1 %v752_v59, %s2931_s21 }
  0xfc   : > { %803 = vrot.lane.b32.xlu0 %v748_v33, %s2931_s21  ;;  %v1174_v33 = vsel %vm1168_vm6, %v1137_v25, %v3630_v2  ;;  %v1085_v2 = vrot.slane %v4436_v54, 3 }
  0xfd   : > { %v906_v49 = vpop.permute.xlu1 %905  ;;  %v1211_v42 = vsel %vm1205_vm8, %v1174_v33, %v662_v16 }
  0xfe   : > { %v904_v10 = vpop.permute.xlu0 %903  ;;  %v1248_v5 = vsel %vm1242_vm9, %v1211_v42, %v784_v57  ;;  %v990_v57 = vsel %vm935_vm3, %v3706_v28, %v989_v48  ;;  %v1084_v48 = vsel %vm1057_vm5, %v1081_v36, %v1083_v3  ;;  %v753_v42 = vrot.slane %v4434_v37, 1  ;;  %v4439_v36 = vld [vmem:[#allocation18_spill] sm:$0xff] }
  0xff   : > { %879 = vrot.lane.b32.xlu1 %v844_v43, %s2932_s26  ;;  %v1285_v55 = vsel %vm1279_vm10, %v1248_v5, %v858_v38  ;;  %v605_v38 = vrot.slane %v4436_v54, 1 }
 0x100   : > { %877 = vrot.lane.b32.xlu0 %v3704_v13, %s2932_s26  ;;  %v1324_v13 = vsel %vm1316_vm11, %v1287_v52, %v906_v49  ;;  %v1322_v60 = vsel %vm1316_vm11, %v1285_v55, %v904_v10  ;;  %v1086_v10 = vsel %vm1057_vm5, %v1083_v3, %v1085_v2  ;;  %v754_v52 = vrot.slane %v4435_v56, 2 }
 0x101   : > { %v1028_v59 = vpop.permute.xlu1 %1027  ;;  %v606_v17 = vsel %vm573_vm1, %v603_v27, %v605_v38 }
 0x102   : > { %v1026_v30 = vpop.permute.xlu0 %1025  ;;  %v1361_v16 = vsel %vm1353_vm12, %v1324_v13, %v1028_v59  ;;  %v4437_v59 = vld [vmem:[#allocation13_spill] sm:$0xff]  ;;  %v4440_v13 = vld [vmem:[#allocation14_spill] sm:$0xff]  ;;  %v755_v37 = vor.u32 %v754_v52, %v753_v42 }
 0x103   : > { %925 = vrot.lane.b32.xlu1 %v3793_v20, %s2933_s29  ;;  %v1359_v49 = vsel %vm1353_vm12, %v1322_v60, %v1026_v30  ;;  %v3841_v33 = vrot.slane %v4437_v59, 1  ;;  %v757_v30 = vrot.slane %v4438_v61, 1  ;;  %v3850_v3 = vcombine.low %v4440_v13, %v291_v12 }
 0x104   : > { %923 = vrot.lane.b32.xlu0 %v844_v43, %s2933_s29 }
 0x105   : > { %v1102_v26 = vpop.permute.xlu1 %1101  ;;  %v3855_v27 = vsel %vm573_vm1, %v605_v38, %v3841_v33  ;;  %v765_v60 = vshll.u32 %v3850_v3, 16  ;;  %v2802_v38 = vld [vmem:[%s3026_s7 + $0x28] sm:$0xff]  }
 0x106   : > { %v1398_v63 = vsel %vm1390_vm13, %v1361_v16, %v1102_v26  ;;  %v1100_v46 = vpop.permute.xlu0 %1099  ;;  %v762_v26 = vshrl.u32 %v3850_v3, 16 }
 0x107   : > { %1047 = vrot.lane.b32.xlu1 %v994_v21, %s2934_s30  ;;  %v1432_v1 = vsel %vm1427_vm14, %v1398_v63, 0  ;;  %v1396_v43 = vsel %vm1390_vm13, %v1359_v49, %v1100_v46  ;;  %v758_v21 = vrot.slane %v4439_v36, 2  ;;  %v995_v46 = vrot.slane %v4438_v61, 2 }
 0x108   : > { %v1431_v41 = vsel %vm1427_vm14, %v1396_v43, 0  ;;  %1045 = vrot.lane.b32.xlu0 %v990_v57, %s2934_s30  ;;  %v847_v57 = vrot.slane %v4437_v59, 2  ;;  %v2803_v59 = vld [vmem:[%s3026_s7 + $0x20] sm:$0xff]  }
 0x109   : > { %v668_v28 = vpop.permute.xlu1 %667  ;;  %2661 = vmatprep.mubr.msk.bf16.mxu0 %vm1471_vm15, %v1431_v41  ;;  %v3857_v56 = vor.u32 %v758_v21, %v757_v30  ;;  %v999_v41 = vrot.slane %v762_v26, 2  ;;  %v1141_v12 = vsel %vm1131_vm7, %v2803_v59, %v3562_v23  ;;  %v4441_v59 = vld [vmem:[#allocation17_spill] sm:$0xff] }
 0x10a   : > { %2662 = vmatmul.mubr.msk.bf16.gmra.mrb[4].mxu0 %vm1471_vm15, %v1432_v1  ;;  %v666_v25 = vpop.permute.xlu0 %665  ;;  %v1143_v1 = vsel %vm1131_vm7, %v2802_v38, %v3560_v18  ;;  %v3887_v18 = vrot.slane %v3850_v3, 2 }
 0x10b   : > { %1121 = vrot.lane.b32.xlu1 %v1086_v10, %s2935_s5  ;;  %v760_v63 = vsel %vm693_vm2, %v755_v37, %v3857_v56  ;;  %v996_v10 = vrot.slane %v4439_v36, 3 }
 0x10c   : > { %1119 = vrot.lane.b32.xlu0 %v1084_v48, %s2935_s5  ;;  %v1000_v48 = vrot.slane %v765_v60, 3 }
 0x10d   : > { %v790_v5 = vpop.permute.xlu1 %789  ;;  %v997_v21 = vor.u32 %v996_v10, %v995_v46 }
 0x10e   : > { %v788_v51 = vpop.permute.xlu0 %787  ;;  %v3900_v23 = vor.u32 %v1000_v48, %v999_v41 }
 0x10f   : > { %641 = vrot.lane.b32.xlu1 %v606_v17, %s2929_s9  ;;  %v998_v48 = vsel %vm935_vm3, %v3786_v32, %v997_v21 }
 0x110   : > { %639 = vrot.lane.b32.xlu0 %v3758_v11, %s2929_s9  ;;  %v756_v11 = vsel %vm693_vm2, %v3760_v0, %v755_v37  ;;  %v1180_v0 = vsel %vm1168_vm6, %v1143_v1, %v3634_v45  ;;  %v1178_v45 = vsel %vm1168_vm6, %v1141_v12, %v3636_v19  ;;  %v3906_v19 = vsel %vm815_vm4, %v847_v57, %v3887_v18 }
 0x111   : > { %v864_v55 = vpop.permute.xlu1 %863  ;;  %v1217_v42 = vsel %vm1205_vm8, %v1180_v0, %v668_v28  ;;  %v1089_v1 = vrot.slane %v3850_v3, 3  ;;  %v609_v12 = vrot.slane %v4441_v59, 1  ;;  %v2806_v59 = vld [vmem:[%s3026_s7 + $0x30] sm:$0xff]  }
 0x112   : > { %v862_v16 = vpop.permute.xlu0 %861  ;;  %v1254_v61 = vsel %vm1242_vm9, %v1217_v42, %v790_v5 }
 0x113   : > { %687 = vrot.lane.b32.xlu1 %v3855_v27, %s2930_s12  ;;  %v1291_v30 = vsel %vm1279_vm10, %v1254_v61, %v864_v55  ;;  %v292_v55 = vld [vmem:[%s3026_s7 + $0x98] sm:$0xf] }
 0x114   : > { %685 = vrot.lane.b32.xlu0 %v606_v17, %s2930_s12  ;;  %v848_v17 = vsel %vm815_vm4, %v845_v6, %v847_v57  ;;  %v1215_v6 = vsel %vm1205_vm8, %v1178_v45, %v666_v25  ;;  %v3921_v57 = vld [vmem:[%s3026_s7 + $0x88] sm:$0xff]  }
 0x115   : > { %v910_v49 = vpop.permute.xlu1 %909  ;;  %v1252_v28 = vsel %vm1242_vm9, %v1215_v6, %v788_v51  ;;  %v1087_v46 = vrot.slane %v3921_v57, 3  ;;  %v610_v6 = vsel %vm573_vm1, %v3841_v33, %v609_v12 }
 0x116   : > { %v908_v43 = vpop.permute.xlu0 %907  ;;  %v1328_v13 = vsel %vm1316_vm11, %v1291_v30, %v910_v49  ;;  %v1289_v5 = vsel %vm1279_vm10, %v1252_v28, %v862_v16  ;;  %v1002_v16 = vsel %vm935_vm3, %v997_v21, %v3900_v23  ;;  %v653_v30 = vrot.slane %v3850_v3, 1 }
 0x117   : > { %809 = vrot.lane.b32.xlu1 %v760_v63, %s2931_s21  ;;  %v1326_v63 = vsel %vm1316_vm11, %v1289_v5, %v908_v43  ;;  %v2421_v43 = vcombine.low %v292_v55, %v292_v55  ;;  %v1090_v42 = vsel %vm1057_vm5, %v1087_v46, %v1089_v1  ;;  %v1088_v32 = vsel %vm1057_vm5, %v1085_v2, %v1087_v46  ;;  %v293_v2 = vld [vmem:[%s3026_s7 + $0x9c] sm:$0xf] }
 0x118   : > { %807 = vrot.lane.b32.xlu0 %v756_v11, %s2931_s21  ;;  %v764_v21 = vrot.slane %v762_v26, 1  ;;  %v767_v28 = vrot.slane %v765_v60, 2  ;;  %v3957_v26 = vld [vmem:[%s3026_s7 + $0xa0] ss:$0 sps:$4 sm:$0x77]   ;;  %v2805_v46 = vld [vmem:[%s3026_s7 + $0x38] sm:$0xff]  }
 0x119   : > { %v1032_v52 = vpop.permute.xlu1 %1031 }
 0x11a   : > { %v1030_v36 = vpop.permute.xlu0 %1029  ;;  %v1365_v25 = vsel %vm1353_vm12, %v1328_v13, %v1032_v52  ;;  %v771_v52 = vshrl.u32 %v2421_v43, 16 }
 0x11b   : > { %883 = vrot.lane.b32.xlu1 %v848_v17, %s2932_s26  ;;  %v1363_v51 = vsel %vm1353_vm12, %v1326_v63, %v1030_v36  ;;  %v655_v36 = vrot.slane %v2421_v43, 1 }
 0x11c   : > { %881 = vrot.lane.b32.xlu0 %v3793_v20, %s2932_s26  ;;  %v773_v13 = vrot.slane %v771_v52, 1 }
 0x11d   : > { %v1106_v37 = vpop.permute.xlu1 %1105  ;;  %v656_v63 = vsel %vm573_vm1, %v653_v30, %v655_v36 }
 0x11e   : > { %v1402_v11 = vsel %vm1390_vm13, %v1365_v25, %v1106_v37  ;;  %v1104_v49 = vpop.permute.xlu0 %1103  ;;  %v3953_v37 = vcombine.low %v292_v55, %v293_v2  ;;  %v1147_v55 = vsel %vm1131_vm7, %v2805_v46, %v3568_v53  ;;  %v1145_v53 = vsel %vm1131_vm7, %v2806_v59, %v3570_v14 }
 0x11f   : > { %929 = vrot.lane.b32.xlu1 %v3906_v19, %s2933_s29  ;;  %v1434_v20 = vsel %vm1427_vm14, %v1402_v11, 0  ;;  %v1400_v38 = vsel %vm1390_vm13, %v1363_v51, %v1104_v49  ;;  %v768_v11 = vor.u32 %v767_v28, %v764_v21  ;;  %v851_v49 = vrot.slane %v2421_v43, 2 }
 0x120   : > { %v1433_v10 = vsel %vm1427_vm14, %v1400_v38, 0  ;;  %927 = vrot.lane.b32.xlu0 %v848_v17, %s2933_s29  ;;  %v774_v17 = vshll.u32 %v2421_v43, 16  ;;  %v1004_v38 = vshrl.u32 %v3953_v37, 16  ;;  %v1013_v43 = vshrl.u32 %v3957_v26, 16 }
 0x121   : > { %v672_v41 = vpop.permute.xlu1 %671  ;;  %2665 = vmatprep.mubr.msk.bf16.mxu0 %vm1471_vm15, %v1433_v10  ;;  %v1007_v10 = vshll.u32 %v3953_v37, 16  ;;  %v769_v52 = vsel %vm693_vm2, %v3857_v56, %v768_v11  ;;  %v897_v14 = vrot.slane %v3957_v26, 2 }
 0x122   : > { %2666 = vmatmul.mubr.msk.bf16.gmra.mrb[8].mxu0 %vm1471_vm15, %v1434_v20  ;;  %v670_v0 = vpop.permute.xlu0 %669  ;;  %v776_v54 = vrot.slane %v774_v17, 2  ;;  %v1182_v17 = vsel %vm1168_vm6, %v1145_v53, %v3645_v7  ;;  %v1006_v56 = vrot.slane %v1004_v38, 2  ;;  %v1015_v7 = vrot.slane %v1013_v43, 2 }
 0x123   : > { %1051 = vrot.lane.b32.xlu1 %v1002_v16, %s2934_s30  ;;  %v654_v16 = vsel %vm573_vm1, %v3841_v33, %v653_v30  ;;  %v1016_v33 = vshll.u32 %v3957_v26, 16  ;;  %v1009_v21 = vrot.slane %v1007_v10, 3 }
 0x124   : > { %1049 = vrot.lane.b32.xlu0 %v998_v48, %s2934_s30  ;;  %v777_v51 = vor.u32 %v776_v54, %v773_v13  ;;  %v1184_v48 = vsel %vm1168_vm6, %v1147_v55, %v3643_v24  ;;  %v852_v24 = vsel %vm815_vm4, %v3887_v18, %v851_v49 }
 0x125   : > { %v794_v45 = vpop.permute.xlu1 %793  ;;  %v1221_v12 = vsel %vm1205_vm8, %v1184_v48, %v672_v41  ;;  %v1219_v41 = vsel %vm1205_vm8, %v1182_v17, %v670_v0  ;;  %v1018_v54 = vrot.slane %v1016_v33, 3  ;;  %v1010_v49 = vor.u32 %v1009_v21, %v1006_v56  ;;  %v2808_v17 = vld [vmem:[%s3026_s7 + $0x40] sm:$0xff]  }
 0x126   : > { %v792_v61 = vpop.permute.xlu0 %791  ;;  %v1091_v48 = vrot.slane %v3953_v37, 3 }
 0x127   : > { %1125 = vrot.lane.b32.xlu1 %v1090_v42, %s2935_s5  ;;  %v1256_v28 = vsel %vm1242_vm9, %v1219_v41, %v792_v61  ;;  %v1011_v43 = vsel %vm935_vm3, %v3900_v23, %v1010_v49  ;;  %v1866_v23 = vld [vmem:[%s4378_s2 + $0x8] sm:$0xff] }
 0x128   : > { %1123 = vrot.lane.b32.xlu0 %v1088_v32, %s2935_s5  ;;  %v1258_v32 = vsel %vm1242_vm9, %v1221_v12, %v794_v45  ;;  %v1865_v12 = vld [vmem:[%s4378_s2] sm:$0xff] }
 0x129   : > { %v868_v5 = vpop.permute.xlu1 %867 }
 0x12a   : > { %v866_v25 = vpop.permute.xlu0 %865  ;;  %v1295_v30 = vsel %vm1279_vm10, %v1258_v32, %v868_v5  ;;  %v1149_v32 = vsel %vm1131_vm7, %v2808_v17, %v3580_v47 }
 0x12b   : > { %645 = vrot.lane.b32.xlu1 %v610_v6, %s2929_s9  ;;  %v895_v6 = vrot.slane %v3953_v37, 2  ;;  %v1293_v45 = vsel %vm1279_vm10, %v1256_v28, %v866_v25  ;;  %v1092_v37 = vsel %vm1057_vm5, %v1089_v1, %v1091_v48 }
 0x12c   : > { %643 = vrot.lane.b32.xlu0 %v3855_v27, %s2929_s9  ;;  %v778_v27 = vsel %vm693_vm2, %v768_v11, %v777_v51 }
 0x12d   : > { %v914_v60 = vpop.permute.xlu1 %913  ;;  %v898_v61 = vsel %vm815_vm4, %v895_v6, %v897_v14 }
 0x12e   : > { %v912_v20 = vpop.permute.xlu0 %911  ;;  %v1332_v13 = vsel %vm1316_vm11, %v1295_v30, %v914_v60 }
 0x12f   : > { %691 = vrot.lane.b32.xlu1 %v656_v63, %s2930_s12  ;;  %v1330_v5 = vsel %vm1316_vm11, %v1293_v45, %v912_v20  ;;  %v896_v20 = vsel %vm815_vm4, %v3887_v18, %v895_v6 }
 0x130   : > { %689 = vrot.lane.b32.xlu0 %v654_v16, %s2930_s12  ;;  %v1019_v16 = vor.u32 %v1018_v54, %v1015_v7 }
 0x131   : > { %v1036_v42 = vpop.permute.xlu1 %1035 }
 0x132   : > { %v1034_v36 = vpop.permute.xlu0 %1033  ;;  %v1369_v2 = vsel %vm1353_vm12, %v1332_v13, %v1036_v42  ;;  %v1020_v10 = vsel %vm935_vm3, %v1010_v49, %v1019_v16  ;;  %v2807_v42 = vld [vmem:[%s3026_s7 + $0x48] sm:$0xff]   ;;  %v1873_v16 = vld [vmem:[%s4378_s2 + $0x40] sm:$0xff] }
 0x133   : > { %813 = vrot.lane.b32.xlu1 %v778_v27, %s2931_s21  ;;  %v1367_v11 = vsel %vm1353_vm12, %v1330_v5, %v1034_v36  ;;  %v1093_v27 = vrot.slane %v3957_v26, 3  ;;  %v1151_v3 = vsel %vm1131_vm7, %v2807_v42, %v3577_v58  ;;  %v1186_v58 = vsel %vm1168_vm6, %v1149_v32, %v3655_v4  ;;  %v1869_v4 = vld [vmem:[%s4378_s2 + $0x20] sm:$0xff] }
 0x134   : > { %811 = vrot.lane.b32.xlu0 %v769_v52, %s2931_s21  ;;  %v1188_v1 = vsel %vm1168_vm6, %v1151_v3, %v3653_v31  ;;  %v1868_v31 = vld [vmem:[%s4378_s2 + $0x18] sm:$0xff] }
 0x135   : > { %v1110_v0 = vpop.permute.xlu1 %1109  ;;  %v1094_v18 = vsel %vm1057_vm5, %v1091_v48, %v1093_v27  ;;  %v1876_v48 = vld [vmem:[%s4378_s2 + $0x58] sm:$0xff] }
 0x136   : > { %v1406_v63 = vsel %vm1390_vm13, %v1369_v2, %v1110_v0  ;;  %v1108_v51 = vpop.permute.xlu0 %1107  ;;  %v1870_v2 = vld [vmem:[%s4378_s2 + $0x28] sm:$0xff] }
 0x137   : > { %887 = vrot.lane.b32.xlu1 %v852_v24, %s2932_s26  ;;  %v1436_v60 = vsel %vm1427_vm14, %v1406_v63, 0  ;;  %v1404_v25 = vsel %vm1390_vm13, %v1367_v11, %v1108_v51  ;;  %v1867_v24 = vld [vmem:[%s4378_s2 + $0x10] sm:$0xff] }
 0x138   : > { %v1435_v46 = vsel %vm1427_vm14, %v1404_v25, 0  ;;  %885 = vrot.lane.b32.xlu0 %v3906_v19, %s2932_s26  ;;  %v1871_v51 = vld [vmem:[%s4378_s2 + $0x30] sm:$0xff]  ;;  %v1872_v25 = vld [vmem:[%s4378_s2 + $0x38] sm:$0xff]  ;;  %s4292_s26 = scalar_lea.hbm %s4379_s3, %s2522_s14 }
 0x139   : > { %v676_v55 = vpop.permute.xlu1 %675  ;;  %2669 = vmatprep.mubr.msk.bf16.mxu0 %vm1471_vm15, %v1435_v46 }
 0x13a   : > { %2670 = vmatmul.mubr.msk.bf16.gmra.mrb[12].mxu0 %vm1471_vm15, %v1436_v60  ;;  %v674_v38 = vpop.permute.xlu0 %673  ;;  %v1225_v6 = vsel %vm1205_vm8, %v1188_v1, %v676_v55  ;;  %v1874_v55 = vld [vmem:[%s4378_s2 + $0x48] sm:$0xff] }
 0x13b   : > { %933 = vrot.lane.b32.xlu1 %v898_v61, %s2933_s29  ;;  %v1223_v30 = vsel %vm1205_vm8, %v1186_v58, %v674_v38  ;;  %v1875_v38 = vld [vmem:[%s4378_s2 + $0x50] sm:$0xff] }
 0x13c   : > { %931 = vrot.lane.b32.xlu0 %v896_v20, %s2933_s29 }
 0x13d   : > { %v798_v19 = vpop.permute.xlu1 %797 }
 0x13e   : > { %v796_v33 = vpop.permute.xlu0 %795  ;;  %v1262_v41 = vsel %vm1242_vm9, %v1225_v6, %v798_v19  ;;  %v1877_v19 = vld [vmem:[%s4378_s2 + $0x60] sm:$0xff] }
 0x13f   : > { %1055 = vrot.lane.b32.xlu1 %v1020_v10, %s2934_s30  ;;  %v1260_v47 = vsel %vm1242_vm9, %v1223_v30, %v796_v33  ;;  %v1878_v33 = vld [vmem:[%s4378_s2 + $0x68] sm:$0xff] }
 0x140   : > { %1053 = vrot.lane.b32.xlu0 %v1011_v43, %s2934_s30  ;;  %v1882_v30 = vld [vmem:[%s4378_s2 + $0x88] sm:$0xff] }
 0x141   : > { %v872_v59 = vpop.permute.xlu1 %871 }
 0x142   : > { %v870_v26 = vpop.permute.xlu0 %869  ;;  %v1299_v36 = vsel %vm1279_vm10, %v1262_v41, %v872_v59 }
 0x143   : > { %1129 = vrot.lane.b32.xlu1 %v1094_v18, %s2935_s5  ;;  %v1297_v28 = vsel %vm1279_vm10, %v1260_v47, %v870_v26  ;;  %v2809_v18 = vld [vmem:[%s3026_s7 + $0x58] sm:$0xff]  }
 0x144   : > { %1127 = vrot.lane.b32.xlu0 %v1092_v37, %s2935_s5  ;;  %v1155_v59 = vsel %vm1131_vm7, %v2809_v18, %v3584_v29  ;;  %s2938_s5 = smov [#allocation2]  }
 0x145   : > { %v918_v53 = vpop.permute.xlu1 %917  ;;  %v1192_v26 = vsel %vm1168_vm6, %v1155_v59, %v3660_v62  ;;  %v1880_v62 = vld [vmem:[%s4378_s2 + $0x78] sm:$0xff]  ;;  %s2820_s6 = sshll.u32 %s2938_s5, 4  ;;  %s2821_s6 = int_to_ptr.vmem [resolvable:$false] %s2820_s6 }
 0x146   : > { %v916_v52 = vpop.permute.xlu0 %915  ;;  %v1336_v21 = vsel %vm1316_vm11, %v1299_v36, %v918_v53  ;;  %v2810_v53 = vld [vmem:[%s3026_s7 + $0x50] sm:$0xff]   ;;  %s2822_s9 = scalar_lea.vmem %s2821_s6, 4608 }
 0x147   : > { %1908 = vperm.xlu1 %2773, %v1866_v23   ;;  %v1334_v54 = vsel %vm1316_vm11, %v1297_v28, %v916_v52  ;;  %v1879_v23 = vld [vmem:[%s4378_s2 + $0x70] sm:$0xff] }
 0x148   : > { %1903 = vperm.xlu0 %2772, %v1865_v12   ;;  %v1153_v12 = vsel %vm1131_vm7, %v2810_v53, %v3586_v50 }
 0x149   : > { %v1040_v14 = vpop.permute.xlu1 %1039  ;;  %v1190_v29 = vsel %vm1168_vm6, %v1153_v12, %v3662_v9  ;;  %v1881_v9 = vld [vmem:[%s4378_s2 + $0x80] sm:$0xff] }
 0x14a   : > { %v1038_v56 = vpop.permute.xlu0 %1037  ;;  %v1373_v13 = vsel %vm1353_vm12, %v1336_v21, %v1040_v14 }
 0x14b   : > { %1913 = vperm.xlu1 %2773, %v1867_v24   ;;  %v1371_v0 = vsel %vm1353_vm12, %v1334_v54, %v1038_v56 }
 0x14c   : > { %1918 = vperm.xlu0 %2772, %v1868_v31  }
 0x14d   : > { %v1114_v7 = vpop.permute.xlu1 %1113 }
 0x14e   : > { %v1410_v45 = vsel %vm1390_vm13, %v1373_v13, %v1114_v7  ;;  %v1112_v5 = vpop.permute.xlu0 %1111  ;;  %v1884_v7 = vld [vmem:[%s4378_s2 + $0x98] sm:$0xff] }
 0x14f   : > { %1923 = vperm.xlu1 %2773, %v1869_v4   ;;  %v1438_v63 = vsel %vm1427_vm14, %v1410_v45, 0  ;;  %v1408_v11 = vsel %vm1390_vm13, %v1371_v0, %v1112_v5  ;;  %v1883_v4 = vld [vmem:[%s4378_s2 + $0x90] sm:$0xff]  ;;  %v1885_v45 = vld [vmem:[%s4378_s2 + $0xa0] sm:$0xff]  ;;  %v1886_v0 = vld [vmem:[%s4378_s2 + $0xa8] sm:$0xff] }
 0x150   : > { %v1437_v61 = vsel %vm1427_vm14, %v1408_v11, 0  ;;  %1928 = vperm.xlu0 %2772, %v1870_v2  }
 0x151   : > { %v680_v60 = vpop.permute.xlu1 %679  ;;  %2673 = vmatprep.mubr.msk.bf16.mxu0 %vm1471_vm15, %v1437_v61 }
 0x152   : > { %2674 = vmatmul.mubr.msk.bf16.gmra.mrb[16].mxu0 %vm1471_vm15, %v1438_v63  ;;  %v678_v49 = vpop.permute.xlu0 %677  ;;  %v1229_v42 = vsel %vm1205_vm8, %v1192_v26, %v680_v60  ;;  %v1887_v63 = vld [vmem:[%s4378_s2 + $0xb0] sm:$0xff]  ;;  %v1889_v60 = vld [vmem:[%s4378_s2 + $0xc0] sm:$0xff] }
 0x153   : > { %1933 = vperm.xlu1 %2773, %v1871_v51   ;;  %v1227_v1 = vsel %vm1205_vm8, %v1190_v29, %v678_v49  ;;  %v1888_v51 = vld [vmem:[%s4378_s2 + $0xb8] sm:$0xff]  ;;  %v1890_v49 = vld [vmem:[%s4378_s2 + $0xc8] sm:$0xff] }
 0x154   : > { %1938 = vperm.xlu0 %2772, %v1872_v25  }
 0x155   : > { %v802_v46 = vpop.permute.xlu1 %801 }
 0x156   : > { %v800_v20 = vpop.permute.xlu0 %799  ;;  %v1266_v52 = vsel %vm1242_vm9, %v1229_v42, %v802_v46 }
 0x157   : > { %1943 = vperm.xlu1 %2773, %v1873_v16   ;;  %v1264_v50 = vsel %vm1242_vm9, %v1227_v1, %v800_v20  ;;  %v2811_v16 = vld [vmem:[%s3026_s7 + $0x68] sm:$0xff]  }
 0x158   : > { %1948 = vperm.xlu0 %2772, %v1874_v55   ;;  %v1159_v46 = vsel %vm1131_vm7, %v2811_v16, %v3593_v44 }
 0x159   : > { %v876_v10 = vpop.permute.xlu1 %875  ;;  %v1196_v20 = vsel %vm1168_vm6, %v1159_v46, %v3668_v22  ;;  %v1892_v22 = vld [vmem:[%s4378_s2 + $0xd8] sm:$0xff] }
 0x15a   : > { %v874_v27 = vpop.permute.xlu0 %873  ;;  %v1303_v24 = vsel %vm1279_vm10, %v1266_v52, %v876_v10  ;;  %v2812_v10 = vld [vmem:[%s3026_s7 + $0x60] sm:$0xff]  }
 0x15b   : > { %1953 = vperm.xlu1 %2773, %v1875_v38   ;;  %v1301_v6 = vsel %vm1279_vm10, %v1264_v50, %v874_v27  ;;  %v1891_v38 = vld [vmem:[%s4378_s2 + $0xd0] sm:$0xff] }
 0x15c   : > { %1958 = vperm.xlu0 %2772, %v1876_v48   ;;  %v1157_v48 = vsel %vm1131_vm7, %v2812_v10, %v3595_v15 }
 0x15d   : > { %v922_v43 = vpop.permute.xlu1 %921  ;;  %v1194_v44 = vsel %vm1168_vm6, %v1157_v48, %v3670_v39  ;;  %v1893_v39 = vld [vmem:[%s4378_s2 + $0xe0] sm:$0xff] }
 0x15e   : > { %v920_v37 = vpop.permute.xlu0 %919  ;;  %v1340_v32 = vsel %vm1316_vm11, %v1303_v24, %v922_v43  ;;  %v1895_v24 = vld [vmem:[%s4378_s2 + $0xf0] sm:$0xff] }
 0x15f   : > { %1963 = vperm.xlu1 %2773, %v1877_v19   ;;  %v1338_v41 = vsel %vm1316_vm11, %v1301_v6, %v920_v37  ;;  %v1897_v6 = vld [vmem:[%s4378_s2 + $0x100] sm:$0xff] }
 0x160   : > { %1968 = vperm.xlu0 %2772, %v1878_v33  }
 0x161   : > { %v1044_v3 = vpop.permute.xlu1 %1043 }
 0x162   : > { %v1042_v17 = vpop.permute.xlu0 %1041  ;;  %v1377_v14 = vsel %vm1353_vm12, %v1340_v32, %v1044_v3  ;;  %v1894_v3 = vld [vmem:[%s4378_s2 + $0xe8] sm:$0xff]  ;;  %v1896_v32 = vld [vmem:[%s4378_s2 + $0xf8] sm:$0xff] }
 0x163   : > { %1973 = vperm.xlu1 %2773, %v1879_v23   ;;  %v1375_v36 = vsel %vm1353_vm12, %v1338_v41, %v1042_v17 }
 0x164   : > { %1978 = vperm.xlu0 %2772, %v1880_v62  }
 0x165   : > { %v1118_v58 = vpop.permute.xlu1 %1117 }
 0x166   : > { %v1414_v31 = vsel %vm1390_vm13, %v1377_v14, %v1118_v58  ;;  %v1116_v56 = vpop.permute.xlu0 %1115  ;;  %v1898_v58 = vld [vmem:[%s4378_s2 + $0x108] sm:$0xff] }
 0x167   : > { %1983 = vperm.xlu1 %2773, %v1881_v9   ;;  %v1440_v47 = vsel %vm1427_vm14, %v1414_v31, 0  ;;  %v1412_v21 = vsel %vm1390_vm13, %v1375_v36, %v1116_v56  ;;  %v1899_v31 = vld [vmem:[%s4378_s2 + $0x110] sm:$0xff]  ;;  %v1900_v36 = vld [vmem:[%s4378_s2 + $0x118] sm:$0xff] }
 0x168   : > { %v1439_v28 = vsel %vm1427_vm14, %v1412_v21, 0  ;;  %1988 = vperm.xlu0 %2772, %v1882_v30  }
 0x169   : > { %v684_v13 = vpop.permute.xlu1 %683  ;;  %2677 = vmatprep.mubr.msk.bf16.mxu1 %vm1471_vm15, %v1439_v28  ;;  %v2813_v28 = vld [vmem:[%s3026_s7 + $0x78] sm:$0xff]  }
 0x16a   : > { %2678 = vmatmul.mubr.msk.bf16.vlgmr.msra.gmra.mrb[0].mxu1 %vm1471_vm15, %v1440_v47  ;;  %v682_v54 = vpop.permute.xlu0 %681  ;;  %v1233_v27 = vsel %vm1205_vm8, %v1196_v20, %v684_v13  ;;  %v1163_v13 = vsel %vm1131_vm7, %v2813_v28, %v3603_v8 }
 0x16b   : > { %1993 = vperm.xlu1 %2773, %v1883_v4   ;;  %v1231_v33 = vsel %vm1205_vm8, %v1194_v44, %v682_v54 }
 0x16c   : > { %1998 = vperm.xlu0 %2772, %v1884_v7  }
 0x16d   : > { %v806_v2 = vpop.permute.xlu1 %805 }
 0x16e   : > { %v804_v5 = vpop.permute.xlu0 %803  ;;  %v1270_v43 = vsel %vm1242_vm9, %v1233_v27, %v806_v2 }
 0x16f   : > { %2003 = vperm.xlu1 %2773, %v1885_v45   ;;  %v1268_v15 = vsel %vm1242_vm9, %v1231_v33, %v804_v5  ;;  %v2814_v45 = vld [vmem:[%s3026_s7 + $0x70] sm:$0xff]  }
 0x170   : > { %2008 = vperm.xlu0 %2772, %v1886_v0   ;;  %v1161_v2 = vsel %vm1131_vm7, %v2814_v45, %v3605_v34 }
 0x171   : > { %v880_v11 = vpop.permute.xlu1 %879 }
 0x172   : > { %v878_v61 = vpop.permute.xlu0 %877  ;;  %v1307_v18 = vsel %vm1279_vm10, %v1270_v43, %v880_v11 }
 0x173   : > { %2013 = vperm.xlu1 %2773, %v1887_v63   ;;  %v1305_v26 = vsel %vm1279_vm10, %v1268_v15, %v878_v61 }
 0x174   : > { %2018 = vperm.xlu0 %2772, %v1888_v51  }
 0x175   : > { %v926_v25 = vpop.permute.xlu1 %925 }
 0x176   : > { %v924_v55 = vpop.permute.xlu0 %923  ;;  %v1344_v37 = vsel %vm1316_vm11, %v1307_v18, %v926_v25 }
 0x177   : > { %2023 = vperm.xlu1 %2773, %v1889_v60   ;;  %v1342_v12 = vsel %vm1316_vm11, %v1305_v26, %v924_v55 }
 0x178   : > { %2028 = vperm.xlu0 %2772, %v1890_v49  }
 0x179   : > { %v1048_v19 = vpop.permute.xlu1 %1047 }
 0x17a   : > { %v1046_v59 = vpop.permute.xlu0 %1045  ;;  %v1381_v23 = vsel %vm1353_vm12, %v1344_v37, %v1048_v19 }
 0x17b   : > { %2033 = vperm.xlu1 %2773, %v1891_v38   ;;  %v1379_v29 = vsel %vm1353_vm12, %v1342_v12, %v1046_v59 }
 0x17c   : > { %2038 = vperm.xlu0 %2772, %v1892_v22  }
 0x17d   : > { %v1122_v53 = vpop.permute.xlu1 %1121 }
 0x17e   : > { %v1418_v42 = vsel %vm1390_vm13, %v1381_v23, %v1122_v53  ;;  %v1120_v52 = vpop.permute.xlu0 %1119  ;;  %v2815_v53 = vld [vmem:[%s3026_s7 + $0x80] sm:$0xff]   ;;  %s4260_s7 = sand.u32 1, %s2910_s16  }
 0x17f   : > { %2043 = vperm.xlu1 %2773, %v1893_v39   ;;  %v1442_v62 = vsel %vm1427_vm14, %v1418_v42, 0  ;;  %v1416_v1 = vsel %vm1390_vm13, %v1379_v29, %v1120_v52  ;;  %v1167_v39 = vsel %vm1131_vm7, %v3921_v57, %v3610_v35  ;;  %v1165_v12 = vsel %vm1131_vm7, %v2815_v53, %v3612_v40  ;;  %s2699_s10 = smul.u32 144, %s4260_s7  ;;  %s2399_s12 = sshll.u32 %s4260_s7, 3 }
 0x180   : > { %v1441_v17 = vsel %vm1427_vm14, %v1416_v1, 0  ;;  %2048 = vperm.xlu0 %2772, %v1894_v3   ;;  %s4274_s13 = scalar_lea.vmem [#allocation4], %s2399_s12  ;;  %s2239_s29 = scalar_lea.sflag [#allocation3], %s4260_s7 }
 0x181   : > { %v642_v50 = vpop.permute.xlu1 %641  ;;  %2681 = vmatprep.mubr.msk.bf16.mxu1 %vm1471_vm15, %v1441_v17  ;;  %s4263_s11 = scalar_lea.vmem [#allocation2], %s2699_s10 }
 0x182   : > { %2682 = vmatmul.mubr.msk.bf16.gmra.mrb[4].mxu1 %vm1471_vm15, %v1442_v62  ;;  %v640_v9 = vpop.permute.xlu0 %639  ;;  %v1200_v54 = vsel %vm1168_vm6, %v1163_v13, %v642_v50  ;;  %s2258_s21 = sshll.u32 %s4263_s11, 4  ;;  %s4287_s21 = int_to_ptr.vmem [resolvable:$true] %s2258_s21 }
 0x183   : > { %2053 = vperm.xlu1 %2773, %v1895_v24   ;;  %v1198_v63 = vsel %vm1168_vm6, %v1161_v2, %v640_v9  ;;  %s2816_s30 = scalar_lea.vmem %s4287_s21, 2304  ;;  %p2823_p1 = scmp.lt.s32.totalorder %s4287_s21, %s2821_s6 }
 0x184   : > { %2058 = vperm.xlu0 %2772, %v1896_v32   ;;  %p2817_p12 = scmp.ne.s32.totalorder %s4287_s21, %s2816_s30  ;;  %p2824_p2 = scmp.lt.s32.totalorder %s2822_s9, %s2816_s30 }
 0x185   : > { %v688_v14 = vpop.permute.xlu1 %687 }
 0x186   : > { %v686_v41 = vpop.permute.xlu0 %685  ;;  %v1237_v0 = vsel %vm1205_vm8, %v1200_v54, %v688_v14  ;;  %p2818_p13 = pnand %p2817_p12, %p3006_p4  ;;  %p2825_p3 = por %p2824_p2, %p2823_p1 }
 0x187   : > { %2063 = vperm.xlu1 %2773, %v1897_v6   ;;  %v1235_v51 = vsel %vm1205_vm8, %v1198_v63, %v686_v41 }
 0x188   : > { %2068 = vperm.xlu0 %2772, %v1898_v58   ;;  %p2819_p0 = pneg %p2818_p13 }
 0x189   : > { %v810_v30 = vpop.permute.xlu1 %809 }
 0x18a   : > { %v808_v56 = vpop.permute.xlu0 %807  ;;  %v1274_v11 = vsel %vm1242_vm9, %v1237_v0, %v810_v30  ;;  %p2826_p5 = pnand %p2825_p3, %p2819_p0 }
 0x18b   : > { %2073 = vperm.xlu1 %2773, %v1899_v31   ;;  %v1272_v8 = vsel %vm1242_vm9, %v1235_v51, %v808_v56 }
 0x18c   : > { %2078 = vperm.xlu0 %2772, %v1900_v36  }
 0x18d   : > { %v884_v47 = vpop.permute.xlu1 %883 }
 0x18e   : > { %v882_v21 = vpop.permute.xlu0 %881  ;;  %v1311_v61 = vsel %vm1279_vm10, %v1274_v11, %v884_v47 }
 0x18f   : > { %v1309_v49 = vsel %vm1279_vm10, %v1272_v8, %v882_v21 }
 0x191   : > { %v930_v4 = vpop.permute.xlu1 %929 }
 0x192   : > { %v928_v7 = vpop.permute.xlu0 %927  ;;  %v1348_v25 = vsel %vm1316_vm11, %v1311_v61, %v930_v4 }
 0x193   : > { %v1346_v46 = vsel %vm1316_vm11, %v1309_v49, %v928_v7 }
 0x195   : > { %v1052_v5 = vpop.permute.xlu1 %1051 }
 0x196   : > { %v1050_v60 = vpop.permute.xlu0 %1049  ;;  %v1385_v34 = vsel %vm1353_vm12, %v1348_v25, %v1052_v5 }
 0x197   : > { %v1383_v20 = vsel %vm1353_vm12, %v1346_v46, %v1050_v60 }
 0x199   : > { %v1126_v16 = vpop.permute.xlu1 %1125 }
 0x19a   : > { %v1422_v55 = vsel %vm1390_vm13, %v1385_v34, %v1126_v16  ;;  %v1124_v38 = vpop.permute.xlu0 %1123 }
 0x19b   : > { %v1444_v10 = vsel %vm1427_vm14, %v1422_v55, 0  ;;  %v1420_v48 = vsel %vm1390_vm13, %v1383_v20, %v1124_v38 }
 0x19c   : > { %v1443_v27 = vsel %vm1427_vm14, %v1420_v48, 0 }
 0x19d   : > { %v646_v19 = vpop.permute.xlu1 %645  ;;  %2685 = vmatprep.mubr.msk.bf16.mxu1 %vm1471_vm15, %v1443_v27 }
 0x19e   : > { %2686 = vmatmul.mubr.msk.bf16.gmra.mrb[8].mxu1 %vm1471_vm15, %v1444_v10  ;;  %v644_v44 = vpop.permute.xlu0 %643  ;;  %v1204_v23 = vsel %vm1168_vm6, %v1167_v39, %v646_v19 }
 0x19f   : > { %v1202_v29 = vsel %vm1168_vm6, %v1165_v12, %v644_v44 }
 0x1a1   : > { %v692_v43 = vpop.permute.xlu1 %691 }
 0x1a2   : > { %v690_v22 = vpop.permute.xlu0 %689  ;;  %v1241_v42 = vsel %vm1205_vm8, %v1204_v23, %v692_v43 }
 0x1a3   : > { %v1239_v62 = vsel %vm1205_vm8, %v1202_v29, %v690_v22 }
 0x1a5   : > { %v814_v33 = vpop.permute.xlu1 %813 }
 0x1a6   : > { %v812_v18 = vpop.permute.xlu0 %811  ;;  %v1278_v52 = vsel %vm1242_vm9, %v1241_v42, %v814_v33 }
 0x1a7   : > { %v1276_v57 = vsel %vm1242_vm9, %v1239_v62, %v812_v18 }
 0x1a9   : > { %v888_v59 = vpop.permute.xlu1 %887 }
 0x1aa   : > { %v886_v15 = vpop.permute.xlu0 %885  ;;  %v1315_v1 = vsel %vm1279_vm10, %v1278_v52, %v888_v59 }
 0x1ab   : > { %v1313_v17 = vsel %vm1279_vm10, %v1276_v57, %v886_v15 }
 0x1ad   : > { %v934_v37 = vpop.permute.xlu1 %933 }
 0x1ae   : > { %v932_v26 = vpop.permute.xlu0 %931  ;;  %v1352_v24 = vsel %vm1316_vm11, %v1315_v1, %v934_v37 }
 0x1af   : > { %v1350_v32 = vsel %vm1316_vm11, %v1313_v17, %v932_v26 }
 0x1b1   : > { %v1056_v3 = vpop.permute.xlu1 %1055 }
 0x1b2   : > { %v1054_v35 = vpop.permute.xlu0 %1053  ;;  %v1389_v40 = vsel %vm1353_vm12, %v1352_v24, %v1056_v3 }
 0x1b3   : > { %v1387_v6 = vsel %vm1353_vm12, %v1350_v32, %v1054_v35 }
 0x1b5   : > { %v1130_v50 = vpop.permute.xlu1 %1129 }
 0x1b6   : > { %v1426_v9 = vsel %vm1390_vm13, %v1389_v40, %v1130_v50  ;;  %v1128_v14 = vpop.permute.xlu0 %1127 }
 0x1b7   : > { %v1446_v58 = vsel %vm1427_vm14, %v1426_v9, 0  ;;  %v1424_v41 = vsel %vm1390_vm13, %v1387_v6, %v1128_v14 }
 0x1b8   : > { %v1445_v31 = vsel %vm1427_vm14, %v1424_v41, 0 }
 0x1b9   : > { %2689 = vmatprep.mubr.msk.bf16.mxu1 %vm1471_vm15, %v1445_v31 }
 0x1ba   : > { %2690 = vmatmul.mubr.msk.bf16.gmra.mrb[12].mxu1 %vm1471_vm15, %v1446_v58 }
 0x1c5   : > { %v2659_v30 = vpop.f32.mrb[0].mxu0 }
 0x1c6   : > { %v1909_v36 = vpop.permute.xlu1 %1908  ;;  %v1542_v56 = vpop.f32.mrb[1].mxu0 }
 0x1c7   : > { %v2660_v47 = vpop.f32.mrb[2].mxu0  ;;  %v1904_v21 = vpop.permute.xlu0 %1903 }
 0x1c8   : > { %v2531_v4 = vpack.c.bf16 %v2660_v47, %v2659_v30  ;;  %v2081_v28 = vmul.f32 %v1904_v21, %v1542_v56  ;;  %v1545_v13 = vpop.f32.mrb[3].mxu0 }
 0x1c9   : > { %v2526_v7 = vpack.c.bf16 %v1545_v13, %v1542_v56  ;;  %v2082_v54 = vmul.f32 %v1909_v36, %v1545_v13 }
 0x1ca   : > { %v1914_v45 = vpop.permute.xlu1 %1913  ;;  %2613 = vst [vmem:[%s4263_s11 + $0x8] sm:$0xff] %v2531_v4   ;;  %v2160_v2 = vmul.f32 %v2081_v28, %v2081_v28 }
 0x1cb   : > { %v2083_v0 = vmul.f32 %v2659_v30, %v1914_v45  ;;  %2527 = vst [vmem:[%s4263_s11] sm:$0xff] %v2526_v7   ;;  %v2118_v5 = vadd.f32 %v2082_v54, %v2081_v28  ;;  %v2161_v63 = vmul.f32 %v2082_v54, %v2082_v54  ;;  %v1919_v11 = vpop.permute.xlu0 %1918 }
 0x1cc   : > { %v2084_v61 = vmul.f32 %v2660_v47, %v1919_v11 }
 0x1cd   : > { %v2162_v51 = vmul.f32 %v2083_v0, %v2083_v0  ;;  %v2196_v60 = vadd.f32 %v2161_v63, %v2160_v2  ;;  %v2119_v8 = vadd.f32 %v2118_v5, %v2083_v0 }
 0x1ce   : > { %v2163_v34 = vmul.f32 %v2084_v61, %v2084_v61  ;;  %v1924_v46 = vpop.permute.xlu1 %1923 }
 0x1cf   : > { %v2197_v25 = vadd.f32 %v2196_v60, %v2162_v51  ;;  %v2120_v49 = vadd.f32 %v2119_v8, %v2084_v61  ;;  %v1929_v55 = vpop.permute.xlu0 %1928 }
 0x1d1   : > { %v2198_v16 = vadd.f32 %v2197_v25, %v2163_v34 }
 0x1d2   : > { %v1934_v20 = vpop.permute.xlu1 %1933 }
 0x1d3   : > { %v1939_v43 = vpop.permute.xlu0 %1938 }
 0x1d6   : > { %v1944_v1 = vpop.permute.xlu1 %1943 }
 0x1d7   : > { %v1949_v35 = vpop.permute.xlu0 %1948 }
 0x1da   : > { %v1954_v57 = vpop.permute.xlu1 %1953 }
 0x1db   : > { %v1959_v6 = vpop.permute.xlu0 %1958 }
 0x1dd   : > { %v2663_v38 = vpop.f32.mrb[4].mxu0 }
 0x1de   : > { %v1558_v10 = vpop.f32.mrb[5].mxu0  ;;  %v2087_v19 = vmul.f32 %v2663_v38, %v1934_v20  ;;  %v1964_v0 = vpop.permute.xlu1 %1963 }
 0x1df   : > { %v2085_v48 = vmul.f32 %v1924_v46, %v1558_v10  ;;  %v2664_v27 = vpop.f32.mrb[6].mxu0  ;;  %v1969_v5 = vpop.permute.xlu0 %1968 }
 0x1e0   : > { %v2541_v44 = vpack.c.bf16 %v2664_v27, %v2663_v38  ;;  %v1561_v22 = vpop.f32.mrb[7].mxu0  ;;  %v2088_v39 = vmul.f32 %v2664_v27, %v1939_v43  ;;  %v2166_v53 = vmul.f32 %v2087_v19, %v2087_v19 }
 0x1e1   : > { %v2121_v33 = vadd.f32 %v2120_v49, %v2085_v48  ;;  %v2164_v18 = vmul.f32 %v2085_v48, %v2085_v48  ;;  %v2536_v59 = vpack.c.bf16 %v1561_v22, %v1558_v10  ;;  %v2086_v15 = vmul.f32 %v1929_v55, %v1561_v22 }
 0x1e2   : > { %2615 = vst [vmem:[%s4263_s11 + $0x18] sm:$0xff] %v2541_v44   ;;  %v2167_v3 = vmul.f32 %v2088_v39, %v2088_v39  ;;  %v1974_v63 = vpop.permute.xlu1 %1973 }
 0x1e3   : > { %v2199_v37 = vadd.f32 %v2198_v16, %v2164_v18  ;;  %2614 = vst [vmem:[%s4263_s11 + $0x10] sm:$0xff] %v2536_v59   ;;  %v2122_v26 = vadd.f32 %v2121_v33, %v2086_v15  ;;  %v2165_v23 = vmul.f32 %v2086_v15, %v2086_v15  ;;  %v1979_v49 = vpop.permute.xlu0 %1978 }
 0x1e5   : > { %v2123_v12 = vadd.f32 %v2122_v26, %v2087_v19  ;;  %v2200_v42 = vadd.f32 %v2199_v37, %v2165_v23 }
 0x1e6   : > { %v1984_v15 = vpop.permute.xlu1 %1983 }
 0x1e7   : > { %v2201_v29 = vadd.f32 %v2200_v42, %v2166_v53  ;;  %v2124_v52 = vadd.f32 %v2123_v12, %v2088_v39  ;;  %v1989_v37 = vpop.permute.xlu0 %1988  ;;  %v2937_v53 = vmov 0.0  }
 0x1e8   : > { %2117 = vst [vmem:[%s4274_s13] sm:$0xff] %v2937_v53 }
 0x1e9   : > { %v2202_v62 = vadd.f32 %v2201_v29, %v2167_v3 }
 0x1ea   : > { %v1994_v39 = vpop.permute.xlu1 %1993 }
 0x1f5   : > { %v2667_v24 = vpop.f32.mrb[8].mxu0 }
 0x1f6   : > { %v1574_v17 = vpop.f32.mrb[9].mxu0  ;;  %v2091_v32 = vmul.f32 %v2667_v24, %v1954_v57 }
 0x1f7   : > { %v2089_v40 = vmul.f32 %v1944_v1, %v1574_v17  ;;  %v2668_v50 = vpop.f32.mrb[10].mxu0 }
 0x1f8   : > { %v2551_v9 = vpack.c.bf16 %v2668_v50, %v2667_v24  ;;  %v1577_v14 = vpop.f32.mrb[11].mxu0  ;;  %v2092_v56 = vmul.f32 %v2668_v50, %v1959_v6  ;;  %v2170_v4 = vmul.f32 %v2091_v32, %v2091_v32 }
 0x1f9   : > { %v2125_v58 = vadd.f32 %v2124_v52, %v2089_v40  ;;  %v2168_v41 = vmul.f32 %v2089_v40, %v2089_v40  ;;  %v2546_v31 = vpack.c.bf16 %v1577_v14, %v1574_v17  ;;  %v2090_v30 = vmul.f32 %v1949_v35, %v1577_v14  ;;  %v1999_v52 = vpop.permute.xlu0 %1998 }
 0x1fa   : > { %2617 = vst [vmem:[%s4263_s11 + $0x28] sm:$0xff] %v2551_v9   ;;  %v2171_v7 = vmul.f32 %v2092_v56, %v2092_v56 }
 0x1fb   : > { %v2203_v36 = vadd.f32 %v2202_v62, %v2168_v41  ;;  %2616 = vst [vmem:[%s4263_s11 + $0x20] sm:$0xff] %v2546_v31   ;;  %v2126_v47 = vadd.f32 %v2125_v58, %v2090_v30  ;;  %v2169_v21 = vmul.f32 %v2090_v30, %v2090_v30 }
 0x1fd   : > { %v2127_v28 = vadd.f32 %v2126_v47, %v2091_v32  ;;  %v2204_v13 = vadd.f32 %v2203_v36, %v2169_v21  ;;  %v2004_v36 = vpop.permute.xlu1 %2003 }
 0x1ff   : > { %v2205_v54 = vadd.f32 %v2204_v13, %v2170_v4  ;;  %v2128_v45 = vadd.f32 %v2127_v28, %v2092_v56  ;;  %v2009_v56 = vpop.permute.xlu0 %2008 }
 0x201   : > { %v2206_v2 = vadd.f32 %v2205_v54, %v2171_v7  ;;  %v2014_v4 = vpop.permute.xlu1 %2013 }
 0x20d   : > { %v2671_v11 = vpop.f32.mrb[12].mxu0 }
 0x20e   : > { %v1590_v51 = vpop.f32.mrb[13].mxu0  ;;  %v2095_v8 = vmul.f32 %v2671_v11, %v1974_v63 }
 0x20f   : > { %v2093_v61 = vmul.f32 %v1964_v0, %v1590_v51  ;;  %v2672_v60 = vpop.f32.mrb[14].mxu0 }
 0x210   : > { %v2561_v25 = vpack.c.bf16 %v2672_v60, %v2671_v11  ;;  %v1593_v34 = vpop.f32.mrb[15].mxu0  ;;  %v2096_v10 = vmul.f32 %v2672_v60, %v1979_v49  ;;  %v2174_v19 = vmul.f32 %v2095_v8, %v2095_v8  ;;  %v2019_v11 = vpop.permute.xlu0 %2018 }
 0x211   : > { %v2129_v16 = vadd.f32 %v2128_v45, %v2093_v61  ;;  %v2172_v46 = vmul.f32 %v2093_v61, %v2093_v61  ;;  %v2556_v55 = vpack.c.bf16 %v1593_v34, %v1590_v51  ;;  %v2094_v20 = vmul.f32 %v1969_v5, %v1593_v34 }
 0x212   : > { %2619 = vst [vmem:[%s4263_s11 + $0x38] sm:$0xff] %v2561_v25   ;;  %v2175_v22 = vmul.f32 %v2096_v10, %v2096_v10 }
 0x213   : > { %v2207_v38 = vadd.f32 %v2206_v2, %v2172_v46  ;;  %2618 = vst [vmem:[%s4263_s11 + $0x30] sm:$0xff] %v2556_v55   ;;  %v2130_v48 = vadd.f32 %v2129_v16, %v2094_v20  ;;  %v2173_v27 = vmul.f32 %v2094_v20, %v2094_v20 }
 0x215   : > { %v2131_v44 = vadd.f32 %v2130_v48, %v2095_v8  ;;  %v2208_v43 = vadd.f32 %v2207_v38, %v2173_v27  ;;  %v2024_v38 = vpop.permute.xlu1 %2023 }
 0x217   : > { %v2209_v33 = vadd.f32 %v2208_v43, %v2174_v19  ;;  %v2132_v18 = vadd.f32 %v2131_v44, %v2096_v10  ;;  %v2029_v10 = vpop.permute.xlu0 %2028 }
 0x219   : > { %v2210_v59 = vadd.f32 %v2209_v33, %v2175_v22  ;;  %v2034_v19 = vpop.permute.xlu1 %2033 }
 0x225   : > { %v2675_v26 = vpop.f32.mrb[16].mxu0 }
 0x226   : > { %v1606_v23 = vpop.f32.mrb[17].mxu0  ;;  %v2099_v3 = vmul.f32 %v2675_v26, %v1994_v39 }
 0x227   : > { %v2097_v12 = vmul.f32 %v1984_v15, %v1606_v23  ;;  %v2676_v42 = vpop.f32.mrb[18].mxu0 }
 0x228   : > { %v2571_v29 = vpack.c.bf16 %v2676_v42, %v2675_v26  ;;  %v1609_v62 = vpop.f32.mrb[19].mxu0  ;;  %v2100_v40 = vmul.f32 %v2676_v42, %v1999_v52  ;;  %v2178_v9 = vmul.f32 %v2099_v3, %v2099_v3  ;;  %v2039_v26 = vpop.permute.xlu0 %2038 }
 0x229   : > { %v2133_v1 = vadd.f32 %v2132_v18, %v2097_v12  ;;  %v2176_v35 = vmul.f32 %v2097_v12, %v2097_v12  ;;  %v2566_v57 = vpack.c.bf16 %v1609_v62, %v1606_v23  ;;  %v2098_v24 = vmul.f32 %v1989_v37, %v1609_v62 }
 0x22a   : > { %2621 = vst [vmem:[%s4263_s11 + $0x48] sm:$0xff] %v2571_v29   ;;  %v2179_v58 = vmul.f32 %v2100_v40, %v2100_v40 }
 0x22b   : > { %v2211_v17 = vadd.f32 %v2210_v59, %v2176_v35  ;;  %2620 = vst [vmem:[%s4263_s11 + $0x40] sm:$0xff] %v2566_v57   ;;  %v2134_v50 = vadd.f32 %v2133_v1, %v2098_v24  ;;  %v2177_v32 = vmul.f32 %v2098_v24, %v2098_v24  ;;  %v2044_v24 = vpop.permute.xlu1 %2043 }
 0x22d   : > { %v2135_v6 = vadd.f32 %v2134_v50, %v2099_v3  ;;  %v2212_v14 = vadd.f32 %v2211_v17, %v2177_v32  ;;  %v2049_v17 = vpop.permute.xlu0 %2048 }
 0x22f   : > { %v2213_v41 = vadd.f32 %v2212_v14, %v2178_v9  ;;  %v2136_v31 = vadd.f32 %v2135_v6, %v2100_v40  ;;  %v2054_v32 = vpop.permute.xlu1 %2053 }
 0x231   : > { %v2214_v30 = vadd.f32 %v2213_v41, %v2179_v58 }
 0x23d   : > { %v2679_v47 = vpop.f32.mrb[0].mxu1 }
 0x23e   : > { %v1622_v21 = vpop.f32.mrb[1].mxu1  ;;  %v2103_v7 = vmul.f32 %v2679_v47, %v2014_v4 }
 0x23f   : > { %v2101_v28 = vmul.f32 %v2004_v36, %v1622_v21  ;;  %v2680_v13 = vpop.f32.mrb[2].mxu1 }
 0x240   : > { %v2581_v54 = vpack.c.bf16 %v2680_v13, %v2679_v47  ;;  %v1625_v45 = vpop.f32.mrb[3].mxu1  ;;  %v2104_v61 = vmul.f32 %v2680_v13, %v2019_v11  ;;  %v2182_v25 = vmul.f32 %v2103_v7, %v2103_v7  ;;  %v2059_v47 = vpop.permute.xlu0 %2058 }
 0x241   : > { %v2137_v2 = vadd.f32 %v2136_v31, %v2101_v28  ;;  %v2180_v0 = vmul.f32 %v2101_v28, %v2101_v28  ;;  %v2576_v5 = vpack.c.bf16 %v1625_v45, %v1622_v21  ;;  %v2102_v63 = vmul.f32 %v2009_v56, %v1625_v45  ;;  %v2064_v11 = vpop.permute.xlu1 %2063 }
 0x242   : > { %2623 = vst [vmem:[%s4263_s11 + $0x58] sm:$0xff] %v2581_v54   ;;  %v2183_v16 = vmul.f32 %v2104_v61, %v2104_v61 }
 0x243   : > { %v2215_v51 = vadd.f32 %v2214_v30, %v2180_v0  ;;  %2622 = vst [vmem:[%s4263_s11 + $0x50] sm:$0xff] %v2576_v5   ;;  %v2138_v60 = vadd.f32 %v2137_v2, %v2102_v63  ;;  %v2181_v8 = vmul.f32 %v2102_v63, %v2102_v63 }
 0x245   : > { %v2139_v49 = vadd.f32 %v2138_v60, %v2103_v7  ;;  %v2216_v34 = vadd.f32 %v2215_v51, %v2181_v8  ;;  %v2069_v51 = vpop.permute.xlu0 %2068  ;;  %v2074_v8 = vpop.permute.xlu1 %2073 }
 0x247   : > { %v2217_v46 = vadd.f32 %v2216_v34, %v2182_v25  ;;  %v2140_v55 = vadd.f32 %v2139_v49, %v2104_v61 }
 0x249   : > { %v2218_v20 = vadd.f32 %v2217_v46, %v2183_v16 }
 0x255   : > { %v2683_v48 = vpop.f32.mrb[4].mxu1 }
 0x256   : > { %v1638_v27 = vpop.f32.mrb[5].mxu1  ;;  %v2107_v22 = vmul.f32 %v2683_v48, %v2034_v19 }
 0x257   : > { %v2105_v44 = vmul.f32 %v2024_v38, %v1638_v27  ;;  %v2684_v43 = vpop.f32.mrb[6].mxu1 }
 0x258   : > { %v2591_v33 = vpack.c.bf16 %v2684_v43, %v2683_v48  ;;  %v1641_v18 = vpop.f32.mrb[7].mxu1  ;;  %v2108_v53 = vmul.f32 %v2684_v43, %v2039_v26  ;;  %v2186_v3 = vmul.f32 %v2107_v22, %v2107_v22  ;;  %v2079_v48 = vpop.permute.xlu0 %2078 }
 0x259   : > { %v2141_v59 = vadd.f32 %v2140_v55, %v2105_v44  ;;  %v2184_v15 = vmul.f32 %v2105_v44, %v2105_v44  ;;  %v2586_v37 = vpack.c.bf16 %v1641_v18, %v1638_v27  ;;  %v2106_v39 = vmul.f32 %v2029_v10, %v1641_v18 }
 0x25a   : > { %2625 = vst [vmem:[%s4263_s11 + $0x68] sm:$0xff] %v2591_v33   ;;  %v2187_v62 = vmul.f32 %v2108_v53, %v2108_v53 }
 0x25b   : > { %v2219_v23 = vadd.f32 %v2218_v20, %v2184_v15  ;;  %2624 = vst [vmem:[%s4263_s11 + $0x60] sm:$0xff] %v2586_v37   ;;  %v2142_v12 = vadd.f32 %v2141_v59, %v2106_v39  ;;  %v2185_v42 = vmul.f32 %v2106_v39, %v2106_v39 }
 0x25d   : > { %v2143_v29 = vadd.f32 %v2142_v12, %v2107_v22  ;;  %v2220_v52 = vadd.f32 %v2219_v23, %v2185_v42 }
 0x25f   : > { %v2221_v1 = vadd.f32 %v2220_v52, %v2186_v3  ;;  %v2144_v35 = vadd.f32 %v2143_v29, %v2108_v53 }
 0x261   : > { %v2222_v57 = vadd.f32 %v2221_v1, %v2187_v62 }
 0x271   : > { %v2687_v40 = vpop.f32.mrb[8].mxu1 }
 0x272   : > { %v1654_v50 = vpop.f32.mrb[9].mxu1  ;;  %v2111_v14 = vmul.f32 %v2687_v40, %v2054_v32 }
 0x273   : > { %v2109_v9 = vmul.f32 %v2044_v24, %v1654_v50  ;;  %v2688_v6 = vpop.f32.mrb[10].mxu1 }
 0x274   : > { %v2601_v58 = vpack.c.bf16 %v2688_v6, %v2687_v40  ;;  %v1657_v41 = vpop.f32.mrb[11].mxu1  ;;  %v2112_v4 = vmul.f32 %v2688_v6, %v2059_v47  ;;  %v2190_v7 = vmul.f32 %v2111_v14, %v2111_v14 }
 0x275   : > { %v2145_v31 = vadd.f32 %v2144_v35, %v2109_v9  ;;  %v2188_v30 = vmul.f32 %v2109_v9, %v2109_v9  ;;  %v2596_v36 = vpack.c.bf16 %v1657_v41, %v1654_v50  ;;  %v2110_v56 = vmul.f32 %v2049_v17, %v1657_v41 }
 0x276   : > { %2627 = vst [vmem:[%s4263_s11 + $0x78] sm:$0xff] %v2601_v58   ;;  %v2191_v2 = vmul.f32 %v2112_v4, %v2112_v4 }
 0x277   : > { %v2223_v21 = vadd.f32 %v2222_v57, %v2188_v30  ;;  %2626 = vst [vmem:[%s4263_s11 + $0x70] sm:$0xff] %v2596_v36   ;;  %v2146_v28 = vadd.f32 %v2145_v31, %v2110_v56  ;;  %v2189_v13 = vmul.f32 %v2110_v56, %v2110_v56 }
 0x279   : > { %v2147_v54 = vadd.f32 %v2146_v28, %v2111_v14  ;;  %v2224_v45 = vadd.f32 %v2223_v21, %v2189_v13 }
 0x27b   : > { %v2225_v0 = vadd.f32 %v2224_v45, %v2190_v7  ;;  %v2148_v5 = vadd.f32 %v2147_v54, %v2112_v4 }
 0x27d   : > { %v2226_v63 = vadd.f32 %v2225_v0, %v2191_v2 }
 0x28d   : > { %v2691_v61 = vpop.f32.mrb[12].mxu1 }
 0x28e   : > { %v1670_v60 = vpop.f32.mrb[13].mxu1  ;;  %v2115_v34 = vmul.f32 %v2691_v61, %v2074_v8 }
 0x28f   : > { %v2113_v25 = vmul.f32 %v2064_v11, %v1670_v60  ;;  %v2692_v49 = vpop.f32.mrb[14].mxu1 }
 0x290   : > { %v2611_v16 = vpack.c.bf16 %v2692_v49, %v2691_v61  ;;  %v1673_v46 = vpop.f32.mrb[15].mxu1  ;;  %v2116_v19 = vmul.f32 %v2692_v49, %v2079_v48 }
 0x291   : > { %v2149_v55 = vadd.f32 %v2148_v5, %v2113_v25  ;;  %v2192_v20 = vmul.f32 %v2113_v25, %v2113_v25  ;;  %v2606_v38 = vpack.c.bf16 %v1673_v46, %v1670_v60  ;;  %v2114_v10 = vmul.f32 %v2069_v51, %v1673_v46 }
 0x292   : > { %2629 = vst [vmem:[%s4263_s11 + $0x88] sm:$0xff] %v2611_v16  }
 0x293   : > { %v2227_v27 = vadd.f32 %v2226_v63, %v2192_v20  ;;  %2628 = vst [vmem:[%s4263_s11 + $0x80] sm:$0xff] %v2606_v38   ;;  %v2150_v44 = vadd.f32 %v2149_v55, %v2114_v10  ;;  %v2193_v43 = vmul.f32 %v2114_v10, %v2114_v10 }
 0x294   : > { %2829 = shalt.err (!%p2826_p5)
}
 0x295   : > { %s2830_s10 = scalar_lea.hbm %s4292_s26, 2304  ;;  %s2834_s14 = scalar_lea.hbm %s4379_s3, 4608 }
 0x296   : > { %p2831_p6 = scmp.ne.s32.totalorder %s4292_s26, %s2830_s10  ;;  %p2835_p10 = scmp.lt.u32.totalorder %s4292_s26, %s4379_s3 }
 0x297   : > { %p2836_p11 = scmp.lt.u32.totalorder %s2834_s14, %s2830_s10  ;;  %p2838_p13 = scmp.lt.u32.totalorder %s2830_s10, %s4292_s26 }
 0x298   : > { %p2832_p7 = pnand %p2831_p6, %p3006_p4 }
 0x299   : > { %p2837_p12 = por %p2836_p11, %p2835_p10 }
 0x29a   : > { %p2833_p9 = pneg %p2832_p7 }
 0x29b   : > { %p2839_p0 = por %p2838_p13, %p2837_p12 }
 0x29d   : > { %p2840_p1 = pnand %p2839_p0, %p2833_p9 }
 0x29f   : > { %2843 = shalt.err (!%p2840_p1)
}
 0x2a0   : > { %s2939_s30 = smov 64   ;;  %v2194_v22 = vmul.f32 %v2115_v34, %v2115_v34  ;;  %v2151_v33 = vadd.f32 %v2150_v44, %v2115_v34  ;;  %v2228_v18 = vadd.f32 %v2227_v27, %v2193_v43  ;;  %v2195_v59 = vmul.f32 %v2116_v19, %v2116_v19  ;;  %s2244_s6 = scalar_lea.sflag [#allocation5], %s4260_s7 }
 0x2a1   : > { %2701 = dma.vmem_to_hbm [thread:$0]  (%p3006_p4), %s4287_s21, 2304, %s4292_s26, %s2239_s29, %s2939_s30, %s2939_s30, %s2928_s8  }
 0x2a2   : > { %v2152_v15 = vadd.f32 %v2151_v33, %v2116_v19  ;;  %v2229_v37 = vadd.f32 %v2228_v18, %v2194_v22  ;;  %s2483_s8 = sshll.u32 %s2918_s18, 7  ;;  %s2275_s21 = sshll.u32 %s4274_s13, 4  ;;  %s4329_s21 = int_to_ptr.vmem [resolvable:$true] %s2275_s21 }
 0x2a3   : > { %s4327_s5 = scalar_lea.hbm %s4380_s4, %s2483_s8  ;;  %s2844_s9 = scalar_lea.vmem %s4329_s21, 128 }
 0x2a4   : > { %v2153_v39 = vrot.slane %v2152_v15, 4  ;;  %v2230_v26 = vadd.f32 %v2229_v37, %v2195_v59  ;;  %p2845_p2 = scmp.ne.s32.totalorder %s4329_s21, %s2844_s9  ;;  %s2940_s18 = smov [#allocation4]  }
 0x2a5   : > { %s2848_s10 = sshll.u32 %s2940_s18, 4  ;;  %s2849_s10 = int_to_ptr.vmem [resolvable:$false] %s2848_s10 }
 0x2a6   : > { %v2154_v23 = vadd.f32 %v2153_v39, %v2152_v15  ;;  %v2231_v53 = vrot.slane %v2230_v26, 4  ;;  %p2846_p3 = pnand %p2845_p2, %p3006_p4  ;;  %s2850_s11 = scalar_lea.vmem %s2849_s10, 256 }
 0x2a7   : > { %p2851_p6 = scmp.lt.s32.totalorder %s4329_s21, %s2849_s10  ;;  %p2852_p7 = scmp.lt.s32.totalorder %s2850_s11, %s2844_s9 }
 0x2a8   : > { %v2155_v12 = vrot.slane %v2154_v23, 2  ;;  %v2232_v42 = vadd.f32 %v2231_v53, %v2230_v26  ;;  %p2847_p5 = pneg %p2846_p3 }
 0x2a9   : > { %p2853_p9 = por %p2852_p7, %p2851_p6 }
 0x2aa   : > { %v2156_v3 = vadd.f32 %v2155_v12, %v2154_v23  ;;  %v2233_v29 = vrot.slane %v2232_v42, 2 }
 0x2ab   : > { %p2854_p10 = pnand %p2853_p9, %p2847_p5 }
 0x2ac   : > { %v2157_v52 = vrot.slane %v2156_v3, 1  ;;  %v2234_v62 = vadd.f32 %v2233_v29, %v2232_v42 }
 0x2ae   : > { %v2158_v1 = vadd.f32 %v2157_v52, %v2156_v3  ;;  %v2235_v35 = vrot.slane %v2234_v62, 1 }
 0x2b0   : > { %2159 = vst [vmem:[%s4274_s13] sm:$0x1] %v2158_v1  ;;  %v2236_v57 = vadd.f32 %v2235_v35, %v2234_v62 }
 0x2b2   : > { %2237 = vst [vmem:[%s4274_s13 + $0x1] sm:$0x1] %v2236_v57 }
 0x2b3   : > { %2857 = shalt.err (!%p2854_p10)
}
 0x2b4   : > { %s2858_s7 = scalar_lea.hbm %s4327_s5, 128  ;;  %s2862_s14 = scalar_lea.hbm %s4380_s4, 256 }
 0x2b5   : > { %p2859_p11 = scmp.ne.s32.totalorder %s4327_s5, %s2858_s7  ;;  %p2863_p0 = scmp.lt.u32.totalorder %s4327_s5, %s4380_s4 }
 0x2b6   : > { %p2864_p1 = scmp.lt.u32.totalorder %s2862_s14, %s2858_s7  ;;  %p2866_p3 = scmp.lt.u32.totalorder %s2858_s7, %s4327_s5 }
 0x2b7   : > { %p2860_p12 = pnand %p2859_p11, %p3006_p4 }
 0x2b8   : > { %p2865_p2 = por %p2864_p1, %p2863_p0 }
 0x2b9   : > { %p2861_p13 = pneg %p2860_p12 }
 0x2ba   : > { %p2867_p5 = por %p2866_p3, %p2865_p2 }
 0x2bc   : > { %p2868_p6 = pnand %p2867_p5, %p2861_p13 }
 0x2be   : > { %2871 = shalt.err (!%p2868_p6)
}
 0x2bf   : > { %2702 = dma.vmem_to_hbm [thread:$0]  (%p3006_p4), %s4329_s21, 128, %s4327_s5, %s2244_s6  }
 0x2c0 PF: > { %p2712_p7 = scmp.ge.s32.totalorder %s2926_s20, 2  ;;  %s2287_s30 = sand.u32 1, %s2906_s15  }
 0x2c1   : > { %s2288_s8 = scalar_lea.sflag [#allocation3], %s2287_s30 }
 0x2c2   : > { %p2706_p9 = pnand %p2712_p7, %p3013_p8 }
 0x2c4   : > { %2897 = dma.done.wait (!%p2706_p9), %s2288_s8, 2304  }
 0x2c5   : > { %2899 = vsyncadd (!%p2706_p9), %s2288_s8, 4294964992  ;;  %s2297_s26 = scalar_lea.sflag [#allocation5], %s2287_s30 }
 0x2c6   : > { %2901 = dma.done.wait (!%p2706_p9), %s2297_s26, 128  }
 0x2c7   : > { %2903 = vsyncadd (!%p2706_p9), %s2297_s26, 4294967168  ;;  %s21_s20 = sadd.s32 1, %s2926_s20   ;;  %s4442_s15 = smov %s2910_s16 }
 0x2c8   : > { %p18_p10 = scmp.ge.s32.totalorder %s21_s20, 4   ;;  %s4443_s16 = smov %s2914_s17 }
 0x2c9   : > { %s4444_s17 = smov %s3019_s28  ;;  %s4445_s18 = smov %s2922_s19 }
 0x2ca   : > { %s4446_s19 = smov %s4448_s23  ;;  %20 = sbr.rel (!%p18_p10) target bundleno = 6 (0x6), region = 88 }
 0x2d1   :  { %2302 = vsyncpa [#allocation3], 1 }
 0x2d2   :  { %2304 = vsyncpa [#allocation3 + $0x1], 1 }
 0x2d3   :  { %2305 = vsyncpa [#allocation5], 1 }
 0x2d4   :  { %2307 = vsyncpa [#allocation5 + $0x1], 1 }

</bundles_post_ra>
